<compile_context>
chip_gen: v7x
topology: tpu7x:2x2x1
jax: 0.10.0
libtpu: 0.0.40
codegen_flags: <defaults>
</compile_context>

<pallas_src>
import functools

import jax
import jax.numpy as jnp
from jax import lax
from jax.experimental import pallas as pl
from jax.experimental.pallas import tpu as pltpu

BIG = 1.0e8          # the 100000000.0 constant in the PyTorch module
EPS = 1e-12          # F.normalize eps
_LANE = 128
_SUBLANE = 8


def _ntxent_kernel(z1_ref, z2_ref, out_ref, a_ref, m_ref, l_ref, *, inv_tmp):
    j = pl.program_id(1)
    num_j = pl.num_programs(1)

    # --- first column step: init LSE state, normalize this row tile once ----
    @pl.when(j == 0)
    def _():
        z1 = z1_ref[...].astype(jnp.float32)
        inv1 = lax.rsqrt(
            jnp.maximum(jnp.sum(z1 * z1, axis=1, keepdims=True), EPS * EPS)
        ) * inv_tmp                                    # fold 1/temperature
        a_ref[...] = (z1 * inv1).astype(jnp.bfloat16)  # reused for all j
        m_ref[...] = jnp.full_like(m_ref, -jnp.inf)
        l_ref[...] = jnp.zeros_like(l_ref)

    # --- normalize the z2 column tile (O(tn*D), ~1/tm of the matmul) --------
    z2 = z2_ref[...].astype(jnp.float32)
    inv2 = lax.rsqrt(
        jnp.maximum(jnp.sum(z2 * z2, axis=1, keepdims=True), EPS * EPS))
    b = (z2 * inv2).astype(jnp.bfloat16)

    # sim tile = (z1n / tmp) @ z2n.T  (contract feature dim; f32 accumulation)
    s = lax.dot_general(
        a_ref[...], b,
        dimension_numbers=(((1,), (1,)), ((), ())),
        preferred_element_type=jnp.float32,
    )  # (tm, tn)
    tm, tn = s.shape

    # --- masked_fill of the *global* diagonal with -1e8 ---------------------
    row_g = pl.program_id(0) * tm + lax.broadcasted_iota(jnp.int32, (tm, tn), 0)
    col_g = j * tn + lax.broadcasted_iota(jnp.int32, (tm, tn), 1)
    s = jnp.where(row_g == col_g, -BIG, s)

    # --- online logsumexp over column tiles ---------------------------------
    m_prev = m_ref[...]
    m_new = jnp.maximum(m_prev, jnp.max(s, axis=1, keepdims=True))
    l_ref[...] = (l_ref[...] * jnp.exp(m_prev - m_new)
                  + jnp.sum(jnp.exp(s - m_new), axis=1, keepdims=True))
    m_ref[...] = m_new

    # --- finalize: cross-entropy rows for this row tile ---------------------
    @pl.when(j == num_j - 1)
    def _():
        # label logit is the masked diagonal == -BIG  =>  loss_row = lse + BIG
        per_row = m_ref[...] + jnp.log(l_ref[...]) + BIG        # (tm, 1)
        partial = jnp.sum(per_row)                              # scalar
        out_ref[...] = jnp.full(out_ref.shape, partial, jnp.float32)


def _pick_tile(n, d, candidates=(512, 256, 128)):
    # Largest aligned tile whose f32 input block stays VMEM-friendly.
    for t in candidates:
        if n % t == 0 and t * d * 4 <= 8 * 1024 * 1024:
            return t
    for t in candidates:
        if n % t == 0:
            return t
    return n  # tiny / indivisible fallback: single full-extent block


def ntxent_loss(z1, z2, tmp=0.5, tm=None, tn=None):
    assert z1.shape == z2.shape and z1.ndim == 2
    n, d = z1.shape
    tm = tm or _pick_tile(n, d)
    tn = tn or _pick_tile(n, d)
    assert n % tm == 0 and n % tn == 0
    num_i, num_j = n // tm, n // tn

    kernel = functools.partial(_ntxent_kernel, inv_tmp=1.0 / tmp)

    itemsize = jnp.dtype(z1.dtype).itemsize
    cost = pl.CostEstimate(
        flops=int(2 * n * n * d + 6 * n * n),
        transcendentals=int(n * n + 3 * n),
        bytes_accessed=int((num_i + 1) * n * d * itemsize
                           + num_i * _SUBLANE * _LANE * 4),
    )

    out = pl.pallas_call(
        kernel,
        out_shape=jax.ShapeDtypeStruct((num_i, _SUBLANE, _LANE), jnp.float32),
        grid_spec=pltpu.PrefetchScalarGridSpec(
            num_scalar_prefetch=0,
            grid=(num_i, num_j),
            in_specs=[
                pl.BlockSpec((tm, d), lambda i, j: (i, 0)),
                pl.BlockSpec((tn, d), lambda i, j: (j, 0)),
            ],
            out_specs=pl.BlockSpec((1, _SUBLANE, _LANE), lambda i, j: (i, 0, 0)),
            scratch_shapes=[
                pltpu.VMEM((tm, d), jnp.bfloat16),  # normalized/scaled z1 tile
                pltpu.VMEM((tm, 1), jnp.float32),   # running max
                pltpu.VMEM((tm, 1), jnp.float32),   # running sum-exp
            ],
        ),
        compiler_params=pltpu.CompilerParams(
            dimension_semantics=("parallel", "arbitrary"),
            vmem_limit_bytes=48 * 1024 * 1024,
        ),
        cost_estimate=cost,
    )(z1, z2)

    # per-row-tile partial sums -> mean over all N rows
    return jnp.sum(out[:, 0, 0]) / n


if __name__ == "__main__":
    key = jax.random.PRNGKey(0)
    k1, k2 = jax.random.split(key)
    N, D = 256, 64  # small batch of embeddings; explicit 128-tiles -> 2x2 grid
    z1 = jax.random.normal(k1, (N, D), dtype=jnp.float32)
    z2 = jax.random.normal(k2, (N, D), dtype=jnp.float32)

    loss = ntxent_loss(z1, z2, tmp=0.5, tm=128, tn=128)
    jax.block_until_ready(loss)

    # Pure-JAX reference (same math as the PyTorch module).
    def ref(z1, z2, tmp=0.5):
        z1n = z1 / jnp.maximum(jnp.linalg.norm(z1, axis=1, keepdims=True), EPS)
        z2n = z2 / jnp.maximum(jnp.linalg.norm(z2, axis=1, keepdims=True), EPS)
        sim = (z1n @ z2n.T) / tmp
        eye = jnp.eye(sim.shape[0], dtype=bool)
        sim = sim - jnp.where(eye, BIG, 0.0)      # sim - eye * 1e8
        sim = jnp.where(eye, -BIG, sim)           # masked_fill(mask, -1e8)
        lse = jax.scipy.special.logsumexp(sim, axis=1)
        return jnp.mean(lse - jnp.diagonal(sim))  # cross_entropy vs arange(N)

    r = ref(z1, z2)
    assert bool(jnp.allclose(loss, r, rtol=1e-5)), (float(loss), float(r))
    print("KERNEL_OK")
</pallas_src>

<mosaic_0001>
module attributes {stable_mosaic.version = 11 : i64} {
  func.func @_ntxent_kernel(%arg0: i32, %arg1: i32, %arg2: memref<128x64xf32, #tpu.memory_space<vmem>>, %arg3: memref<128x64xf32, #tpu.memory_space<vmem>>, %arg4: memref<1x8x128xf32, #tpu.memory_space<vmem>>, %arg5: memref<128x64xbf16, #tpu.memory_space<vmem>>, %arg6: memref<128x1xf32, #tpu.memory_space<vmem>>, %arg7: memref<128x1xf32, #tpu.memory_space<vmem>>) attributes {dimension_semantics = [#tpu.dimension_semantics<parallel>, #tpu.dimension_semantics<arbitrary>], iteration_bounds = array<i64: 2, 2>, scalar_prefetch = 0 : i64, scratch_operands = 3 : i64, tpu.core_type = #tpu.core_type<tc>, window_params = [{transform_indices = @transform_0, window_bounds = array<i64: 128, 64>}, {transform_indices = @transform_1, window_bounds = array<i64: 128, 64>}, {transform_indices = @transform_2, window_bounds = array<i64: 1, 8, 128>}]} {
    %c0_i32 = arith.constant 0 : i32
    %0 = arith.cmpi eq, %arg1, %c0_i32 : i32
    %1 = arith.extui %0 : i1 to i32
    %c0_i32_0 = arith.constant 0 : i32
    %2 = arith.cmpi ne, %1, %c0_i32_0 : i32
    scf.if %2 {
      %c0_19 = arith.constant 0 : index
      %c0_20 = arith.constant 0 : index
      %45 = vector.load %arg2[%c0_19, %c0_20] : memref<128x64xf32, #tpu.memory_space<vmem>>, vector<128x64xf32>
      %46 = arith.mulf %45, %45 : vector<128x64xf32>
      %cst_21 = arith.constant dense<0.000000e+00> : vector<128xf32>
      %47 = vector.multi_reduction <add>, %46, %cst_21 [1] : vector<128x64xf32> to vector<128xf32>
      %48 = vector.shape_cast %47 : vector<128xf32> to vector<128x1xf32>
      %cst_22 = arith.constant 1.000000e-24 : f32
      %49 = vector.broadcast %cst_22 : f32 to vector<128x1xf32>
      %50 = arith.maximumf %48, %49 : vector<128x1xf32>
      %51 = math.rsqrt %50 : vector<128x1xf32>
      %cst_23 = arith.constant 2.000000e+00 : f32
      %52 = vector.broadcast %cst_23 : f32 to vector<128x1xf32>
      %53 = arith.mulf %51, %52 : vector<128x1xf32>
      %54 = vector.broadcast %53 : vector<128x1xf32> to vector<128x64xf32>
      %55 = arith.mulf %45, %54 : vector<128x64xf32>
      %56 = arith.truncf %55 : vector<128x64xf32> to vector<128x64xbf16>
      %c0_24 = arith.constant 0 : index
      %c0_25 = arith.constant 0 : index
      %57 = vector.load %arg5[%c0_24, %c0_25] : memref<128x64xbf16, #tpu.memory_space<vmem>>, vector<128x64xbf16>
      tpu.vector_store %arg5[%c0_24, %c0_25], %56 {strides = array<i32>} : memref<128x64xbf16, #tpu.memory_space<vmem>>, vector<128x64xbf16>,
      %cst_26 = arith.constant 0xFF800000 : f32
      %58 = vector.broadcast %cst_26 : f32 to vector<128x1xf32>
      %c0_27 = arith.constant 0 : index
      %c0_28 = arith.constant 0 : index
      %59 = vector.load %arg6[%c0_27, %c0_28] : memref<128x1xf32, #tpu.memory_space<vmem>>, vector<128x1xf32>
      tpu.vector_store %arg6[%c0_27, %c0_28], %58 {strides = array<i32>} : memref<128x1xf32, #tpu.memory_space<vmem>>, vector<128x1xf32>,
      %cst_29 = arith.constant 0.000000e+00 : f32
      %60 = vector.broadcast %cst_29 : f32 to vector<128x1xf32>
      %c0_30 = arith.constant 0 : index
      %c0_31 = arith.constant 0 : index
      %61 = vector.load %arg7[%c0_30, %c0_31] : memref<128x1xf32, #tpu.memory_space<vmem>>, vector<128x1xf32>
      tpu.vector_store %arg7[%c0_30, %c0_31], %60 {strides = array<i32>} : memref<128x1xf32, #tpu.memory_space<vmem>>, vector<128x1xf32>,
    } else {
    }
    %c0 = arith.constant 0 : index
    %c0_1 = arith.constant 0 : index
    %3 = vector.load %arg3[%c0, %c0_1] : memref<128x64xf32, #tpu.memory_space<vmem>>, vector<128x64xf32>
    %4 = arith.mulf %3, %3 : vector<128x64xf32>
    %cst = arith.constant dense<0.000000e+00> : vector<128xf32>
    %5 = vector.multi_reduction <add>, %4, %cst [1] : vector<128x64xf32> to vector<128xf32>
    %6 = vector.shape_cast %5 : vector<128xf32> to vector<128x1xf32>
    %cst_2 = arith.constant 1.000000e-24 : f32
    %7 = vector.broadcast %cst_2 : f32 to vector<128x1xf32>
    %8 = arith.maximumf %6, %7 : vector<128x1xf32>
    %9 = math.rsqrt %8 : vector<128x1xf32>
    %10 = vector.broadcast %9 : vector<128x1xf32> to vector<128x64xf32>
    %11 = arith.mulf %3, %10 : vector<128x64xf32>
    %12 = arith.truncf %11 : vector<128x64xf32> to vector<128x64xbf16>
    %c0_3 = arith.constant 0 : index
    %c0_4 = arith.constant 0 : index
    %13 = vector.load %arg5[%c0_3, %c0_4] : memref<128x64xbf16, #tpu.memory_space<vmem>>, vector<128x64xbf16>
    %cst_5 = arith.constant dense<0.000000e+00> : vector<128x128xf32>
    %14 = tpu.matmul %13, %12, %cst_5 {dimension_numbers = #tpu.dot_dimension_numbers<[1], [1], [0], [0], [0, 0, 1, 0], [], []>} : vector<128x64xbf16>, vector<128x64xbf16>, vector<128x128xf32> -> vector<128x128xf32>
    %c128_i32 = arith.constant 128 : i32
    %15 = arith.muli %arg0, %c128_i32 : i32
    %16 = tpu.iota {dimensions = array<i32: 0>} : vector<128x128xi32>
    %17 = vector.broadcast %15 : i32 to vector<128x128xi32>
    %18 = arith.addi %17, %16 : vector<128x128xi32>
    %c128_i32_6 = arith.constant 128 : i32
    %19 = arith.muli %arg1, %c128_i32_6 : i32
    %20 = tpu.iota {dimensions = array<i32: 1>} : vector<128x128xi32>
    %21 = vector.broadcast %19 : i32 to vector<128x128xi32>
    %22 = arith.addi %21, %20 : vector<128x128xi32>
    %23 = arith.cmpi eq, %18, %22 : vector<128x128xi32>
    %cst_7 = arith.constant -1.000000e+08 : f32
    %24 = vector.broadcast %cst_7 : f32 to vector<128x128xf32>
    %25 = arith.select %23, %24, %14 : vector<128x128xi1>, vector<128x128xf32>
    %c0_8 = arith.constant 0 : index
    %c0_9 = arith.constant 0 : index
    %26 = vector.load %arg6[%c0_8, %c0_9] : memref<128x1xf32, #tpu.memory_space<vmem>>, vector<128x1xf32>
    %cst_10 = arith.constant dense<0xFF800000> : vector<128xf32>
    %27 = vector.multi_reduction <maximumf>, %25, %cst_10 [1] : vector<128x128xf32> to vector<128xf32>
    %28 = vector.shape_cast %27 : vector<128xf32> to vector<128x1xf32>
    %29 = arith.maximumf %26, %28 : vector<128x1xf32>
    %c0_11 = arith.constant 0 : index
    %c0_12 = arith.constant 0 : index
    %30 = vector.load %arg7[%c0_11, %c0_12] : memref<128x1xf32, #tpu.memory_space<vmem>>, vector<128x1xf32>
    %31 = arith.subf %26, %29 : vector<128x1xf32>
    %32 = math.exp %31 : vector<128x1xf32>
    %33 = arith.mulf %30, %32 : vector<128x1xf32>
    %34 = vector.broadcast %29 : vector<128x1xf32> to vector<128x128xf32>
    %35 = arith.subf %25, %34 : vector<128x128xf32>
    %36 = math.exp %35 : vector<128x128xf32>
    %cst_13 = arith.constant dense<0.000000e+00> : vector<128xf32>
    %37 = vector.multi_reduction <add>, %36, %cst_13 [1] : vector<128x128xf32> to vector<128xf32>
    %38 = vector.shape_cast %37 : vector<128xf32> to vector<128x1xf32>
    %39 = arith.addf %33, %38 : vector<128x1xf32>
    %c0_14 = arith.constant 0 : index
    %c0_15 = arith.constant 0 : index
    %40 = vector.load %arg7[%c0_14, %c0_15] : memref<128x1xf32, #tpu.memory_space<vmem>>, vector<128x1xf32>
    tpu.vector_store %arg7[%c0_14, %c0_15], %39 {strides = array<i32>} : memref<128x1xf32, #tpu.memory_space<vmem>>, vector<128x1xf32>,
    %c0_16 = arith.constant 0 : index
    %c0_17 = arith.constant 0 : index
    %41 = vector.load %arg6[%c0_16, %c0_17] : memref<128x1xf32, #tpu.memory_space<vmem>>, vector<128x1xf32>
    tpu.vector_store %arg6[%c0_16, %c0_17], %29 {strides = array<i32>} : memref<128x1xf32, #tpu.memory_space<vmem>>, vector<128x1xf32>,
    %c1_i32 = arith.constant 1 : i32
    %42 = arith.cmpi eq, %arg1, %c1_i32 : i32
    %43 = arith.extui %42 : i1 to i32
    %c0_i32_18 = arith.constant 0 : i32
    %44 = arith.cmpi ne, %43, %c0_i32_18 : i32
    scf.if %44 {
      %c0_19 = arith.constant 0 : index
      %c0_20 = arith.constant 0 : index
      %45 = vector.load %arg6[%c0_19, %c0_20] : memref<128x1xf32, #tpu.memory_space<vmem>>, vector<128x1xf32>
      %c0_21 = arith.constant 0 : index
      %c0_22 = arith.constant 0 : index
      %46 = vector.load %arg7[%c0_21, %c0_22] : memref<128x1xf32, #tpu.memory_space<vmem>>, vector<128x1xf32>
      %47 = math.log %46 : vector<128x1xf32>
      %48 = arith.addf %45, %47 : vector<128x1xf32>
      %cst_23 = arith.constant 1.000000e+08 : f32
      %49 = vector.broadcast %cst_23 : f32 to vector<128x1xf32>
      %50 = arith.addf %48, %49 : vector<128x1xf32>
      %51 = vector.shape_cast %50 : vector<128x1xf32> to vector<1x128x1xf32>
      %cst_24 = arith.constant dense<0.000000e+00> : vector<1xf32>
      %52 = vector.multi_reduction <add>, %51, %cst_24 [1, 2] : vector<1x128x1xf32> to vector<1xf32>
      %53 = vector.shape_cast %52 : vector<1xf32> to vector<1x1x1xf32>
      %54 = vector.extract %53[0, 0, 0] : f32 from vector<1x1x1xf32>
      %55 = vector.broadcast %54 : f32 to vector<1x8x128xf32>
      %c0_25 = arith.constant 0 : index
      %c0_26 = arith.constant 0 : index
      %c0_27 = arith.constant 0 : index
      %56 = vector.load %arg4[%c0_25, %c0_26, %c0_27] : memref<1x8x128xf32, #tpu.memory_space<vmem>>, vector<1x8x128xf32>
      tpu.vector_store %arg4[%c0_25, %c0_26, %c0_27], %55 {strides = array<i32>} : memref<1x8x128xf32, #tpu.memory_space<vmem>>, vector<1x8x128xf32>,
    } else {
    }
    return
  }
  func.func @transform_0(%arg0: i32, %arg1: i32) -> (i32, i32) {
    %c0_i32 = arith.constant 0 : i32
    %c0_i32_0 = arith.constant 0 : i32
    return %arg0, %c0_i32 : i32, i32
  }
  func.func @transform_1(%arg0: i32, %arg1: i32) -> (i32, i32) {
    %c0_i32 = arith.constant 0 : i32
    %c0_i32_0 = arith.constant 0 : i32
    return %arg1, %c0_i32 : i32, i32
  }
  func.func @transform_2(%arg0: i32, %arg1: i32) -> (i32, i32, i32) {
    %c0_i32 = arith.constant 0 : i32
    %c0_i32_0 = arith.constant 0 : i32
    %c0_i32_1 = arith.constant 0 : i32
    return %arg0, %c0_i32, %c0_i32_0 : i32, i32, i32
  }
}

</mosaic_0001>

<bundles_post_ra>
// kernel: tpu_custom_call.1
= control target key start
LH: loop header
LB: loop body
LE: loop exit
PB: predicated region body
PF: predicated region fallthrough
CT: control target
= control target key end

     0   :  { %7 = vsyncpa [#allocation6], 0  ;;  %s2594_s0 = inlined_call_operand.vmem [shape: f32[256,64], index: 0, kind: input, shape index: {}]   ;;  %s2595_s1 = inlined_call_operand.vmem [shape: f32[256,64], index: 1, kind: input, shape index: {}]   ;;  %s2596_s2 = inlined_call_operand.hbm [shape: f32[2,8,128], index: 2, kind: output, shape index: {}]  }
   0x1   :  { %9 = vsyncpa [#allocation6 + $0x1], 0  ;;  %s1789_s9 = smov 0   ;;  %s1791_s10 = smov 0  }
   0x2   :  { %s1793_s11 = smov 0   ;;  %s1795_s12 = smov 0  }
   0x3   :  { %s1797_s13 = smov 0   ;;  %s1799_s14 = smov 0  }
   0x4   :  { %s1801_s15 = smov 0   ;;  %s1803_s16 = smov 0  }
   0x5 LB: > { %s1330_s17 = sadd.s32 4294967295, %s1768_s16   ;;  %s1331_s18 = sadd.s32 4294967294, %s1768_s16   ;;  %s1768_s16 = sphi %s1803_s16, %s15_s16   ;;  %s1764_s15 = sphi %s1801_s15, %s2619_s15   ;;  %s1760_s14 = sphi %s1799_s14, %s2618_s14   ;;  %s1756_s13 = sphi %s1797_s13, %s2617_s13   ;;  %s1752_s12 = sphi %s1795_s12, %s2616_s12   ;;  %s1748_s11 = sphi %s1793_s11, %s2615_s11   ;;  %s1744_s10 = sphi %s1791_s10, %s2614_s10   ;;  %s1740_s9 = sphi %s1789_s9, %s2613_s9  }
   0x6   : > { %s24_s19 = sadd.s32 1, %s1760_s14  ;;  %s27_s20 = sadd.s32 1, %s1764_s15 }
   0x7   : > { %p25_p0 = scmp.ge.s32.totalorder %s24_s19, 2  ;;  %p96_p1 = scmp.ne.s32.totalorder %s1748_s11, %s1744_s10 }
   0x8   : > { %p97_p2 = scmp.eq.s32.totalorder %s1330_s17, 3  ;;  %p102_p4 = scmp.ne.s32.totalorder %s1744_s10, %s1740_s9 }
   0x9   : > { %s2621_s19 = smov (%p25_p0, %s24_s19), 0  ;;  %s2623_s20 = smov (!%p25_p0, %s27_s20), %s1764_s15 }
   0xa   : > { %p1838_p3 = por %p97_p2, %p96_p1  ;;  %p29_p5 = scmp.ge.s32.totalorder %s2623_s20, 2 }
   0xb   : > { %p103_p6 = scmp.eq.s32.totalorder %s1331_s18, 3  ;;  %p1334_p7 = scmp.ge.s32.totalorder %s1768_s16, 1 }
   0xc   : > { %p139_p8 = scmp.lt.s32.totalorder %s1768_s16, 5  ;;  %s2625_s20 = smov (%p29_p5, %s2623_s20), 0 }
   0xd   : > { %p1848_p9 = por %p103_p6, %p102_p4  ;;  %s83_s23 = ssub.s32 %s1764_s15, %s2625_s20 }
   0xe   : > { %p140_p10 = pnand %p1334_p7, %p139_p8  ;;  %s86_s24 = sadd.s32 1, %s1748_s11 }
   0xf   : > { %p84_p11 = scmp.eq.s32.totalorder %s83_s23, 0  ;;  %s163_s26 = sand.u32 (!%p140_p10), 1, %s1744_s10  }
  0x10   : > { %143 = sbr.rel (%p140_p10) target bundleno = 1414 (0x586), region = 28  ;;  %s1336_s27 = sshll.u32 (!%p140_p10), %s1756_s13, 4 }
  0x11   : > { %s1856_s25 = scalar_select %p84_p11, %s1748_s11, %s86_s24  }
  0x12   : > { %s1862_s28 = sshll.u32 (!%p140_p10), %s163_s26, 3  ;;  %p167_p12 = scmp.lt.s32.totalorder (!%p140_p10), %s1336_s27, 31 }
  0x13   : > { %s1338_s29 = sshll.u32 (!%p140_p10), %s1752_s12, 4  ;;  %s165_s18 = scalar_lea.vmem (!%p140_p10), [#allocation5], %s1862_s28 }
  0x14   : > { %p173_p13 = scmp.lt.s32.totalorder (!%p140_p10), %s1338_s29, 31  ;;  %p1340_p0 = scmp.ne.s32.totalorder (!%p140_p10), %s1752_s12, 0 }
  0x17   : > { %s2627_s27 = smov (!%p167_p12, %s1336_s27), 31  ;;  %s2629_s29 = smov (!%p173_p13, %s1338_s29), 31 }
  0x18   : > { %s1337_s30 = sshll.u32 %s2627_s27, 3  ;;  %s1339_s6 = sshll.u32 %s2629_s29, 3  ;;  %vm215_vm0 = vcmask (!%p1340_p0), 523264   ;;  %vm344_vm1 = vcmask (!%p1340_p0), 7168   ;;  %v1770_v48 = vmov (!%p1340_p0), -inf   ;;  %v1771_v49 = vmov (!%p1340_p0), 0.0  }
  0x19   : > { %s1868_s5 = scalar_lea.vmem %s2594_s0, %s1337_s30  ;;  %s1873_s17 = scalar_lea.vmem %s2595_s1, %s1339_s6  ;;  %345 = vst.msk [vmem:[#allocation3] sm:$0xff] (!%p1340_p0), %vm344_vm1, %v1770_v48  ;;  %346 = vst.msk [vmem:[#allocation3 + $0x8] sm:$0xff] (!%p1340_p0), %vm344_vm1, %v1770_v48 }
  0x1a   : > { %182 = sbr.rel (%p1340_p0) target bundleno = 221 (0xdd), region = 32  ;;  %v1878_v0 = vld [vmem:[%s1868_s5 + $0x10] sm:$0xff] (!%p1340_p0)  ;;  %v1881_v1 = vld [vmem:[%s1868_s5] sm:$0xff] (!%p1340_p0)  ;;  %v1884_v2 = vld [vmem:[%s1868_s5 + $0x18] sm:$0xff] (!%p1340_p0)  ;;  %347 = vst.msk [vmem:[#allocation3 + $0x10] sm:$0xff] (!%p1340_p0), %vm344_vm1, %v1770_v48 }
  0x1b   : > { %v201_v3 = vmul.f32 (!%p1340_p0), %v1878_v0, %v1878_v0  ;;  %v199_v4 = vmul.f32 (!%p1340_p0), %v1881_v1, %v1881_v1  ;;  %v202_v5 = vmul.f32 (!%p1340_p0), %v1884_v2, %v1884_v2  ;;  %v1893_v6 = vld [vmem:[%s1868_s5 + $0x8] sm:$0xff] (!%p1340_p0)  ;;  %v1901_v9 = vld [vmem:[%s1868_s5 + $0x20] sm:$0xff] (!%p1340_p0)  ;;  %v1912_v16 = vld [vmem:[%s1868_s5 + $0x38] sm:$0xff] (!%p1340_p0)  ;;  %348 = vst.msk [vmem:[#allocation3 + $0x18] sm:$0xff] (!%p1340_p0), %vm344_vm1, %v1770_v48 }
  0x1c   : > { %v200_v7 = vmul.f32 (!%p1340_p0), %v1893_v6, %v1893_v6  ;;  %v1898_v8 = vld [vmem:[%s1868_s5 + $0x28] sm:$0xff] (!%p1340_p0)  ;;  %v203_v15 = vmul.f32 (!%p1340_p0), %v1901_v9, %v1901_v9  ;;  %v1915_v17 = vld [vmem:[%s1868_s5 + $0x30] sm:$0xff] (!%p1340_p0)  ;;  %v206_v20 = vmul.f32 (!%p1340_p0), %v1912_v16, %v1912_v16  ;;  %v1927_v23 = vld [vmem:[%s1868_s5 + $0x40] sm:$0xff] (!%p1340_p0)  ;;  %349 = vst.msk [vmem:[#allocation3 + $0x20] sm:$0xff] (!%p1340_p0), %vm344_vm1, %v1770_v48 }
  0x1d   : > { %v222_v10 = vsel (!%p1340_p0), %vm215_vm0, %v201_v3, 0.0  ;;  %v216_v11 = vsel (!%p1340_p0), %vm215_vm0, %v199_v4, 0.0  ;;  %v225_v12 = vsel (!%p1340_p0), %vm215_vm0, %v202_v5, 0.0  ;;  %v204_v14 = vmul.f32 (!%p1340_p0), %v1898_v8, %v1898_v8  ;;  %v1924_v22 = vld [vmem:[%s1868_s5 + $0x48] sm:$0xff] (!%p1340_p0)  ;;  %v1936_v28 = vld [vmem:[%s1868_s5 + $0x58] sm:$0xff] (!%p1340_p0)  ;;  %v1939_v29 = vld [vmem:[%s1868_s5 + $0x50] sm:$0xff] (!%p1340_p0) }
  0x1e   : > { %223 = vadd.xlane.f32.xlu1 (!%p1340_p0), %v222_v10  ;;  %217 = vadd.xlane.f32.xlu0 (!%p1340_p0), %v216_v11  ;;  %v219_v13 = vsel (!%p1340_p0), %vm215_vm0, %v200_v7, 0.0  ;;  %v228_v19 = vsel (!%p1340_p0), %vm215_vm0, %v203_v15, 0.0  ;;  %v205_v21 = vmul.f32 (!%p1340_p0), %v1915_v17, %v1915_v17  ;;  %v237_v24 = vsel (!%p1340_p0), %vm215_vm0, %v206_v20, 0.0  ;;  %v1948_v34 = vld [vmem:[%s1868_s5 + $0x68] sm:$0xff] (!%p1340_p0)  ;;  %v1951_v35 = vld [vmem:[%s1868_s5 + $0x60] sm:$0xff] (!%p1340_p0)  ;;  %v1960_v40 = vld [vmem:[%s1868_s5 + $0x78] sm:$0xff] (!%p1340_p0) }
  0x1f   : > { %v231_v18 = vsel (!%p1340_p0), %vm215_vm0, %v204_v14, 0.0  ;;  %v208_v26 = vmul.f32 (!%p1340_p0), %v1924_v22, %v1924_v22  ;;  %v207_v27 = vmul.f32 (!%p1340_p0), %v1927_v23, %v1927_v23  ;;  %v210_v32 = vmul.f32 (!%p1340_p0), %v1936_v28, %v1936_v28  ;;  %v1963_v41 = vld [vmem:[%s1868_s5 + $0x70] sm:$0xff] (!%p1340_p0)  ;;  %350 = vst.msk [vmem:[#allocation3 + $0x28] sm:$0xff] (!%p1340_p0), %vm344_vm1, %v1770_v48  ;;  %351 = vst.msk [vmem:[#allocation3 + $0x30] sm:$0xff] (!%p1340_p0), %vm344_vm1, %v1770_v48 }
  0x20   : > { %v234_v25 = vsel (!%p1340_p0), %vm215_vm0, %v205_v21, 0.0  ;;  %v209_v33 = vmul.f32 (!%p1340_p0), %v1939_v29, %v1939_v29  ;;  %v212_v38 = vmul.f32 (!%p1340_p0), %v1948_v34, %v1948_v34  ;;  %v211_v39 = vmul.f32 (!%p1340_p0), %v1951_v35, %v1951_v35  ;;  %352 = vst.msk [vmem:[#allocation3 + $0x38] sm:$0xff] (!%p1340_p0), %vm344_vm1, %v1770_v48  ;;  %353 = vst.msk [vmem:[#allocation3 + $0x40] sm:$0xff] (!%p1340_p0), %vm344_vm1, %v1770_v48 }
  0x21   : > { %v243_v30 = vsel %vm215_vm0, %v208_v26, 0.0  ;;  %v240_v31 = vsel %vm215_vm0, %v207_v27, 0.0  ;;  %v249_v36 = vsel %vm215_vm0, %v210_v32, 0.0  ;;  %v214_v44 = vmul.f32 %v1960_v40, %v1960_v40  ;;  %354 = vst.msk [vmem:[#allocation3 + $0x48] sm:$0xff] %vm344_vm1, %v1770_v48  ;;  %355 = vst.msk [vmem:[#allocation3 + $0x50] sm:$0xff] %vm344_vm1, %v1770_v48 }
  0x22   : > { %226 = vadd.xlane.f32.xlu1 %v225_v12  ;;  %220 = vadd.xlane.f32.xlu0 %v219_v13  ;;  %v246_v37 = vsel %vm215_vm0, %v209_v33, 0.0  ;;  %v255_v42 = vsel %vm215_vm0, %v212_v38, 0.0  ;;  %v252_v43 = vsel %vm215_vm0, %v211_v39, 0.0  ;;  %v213_v45 = vmul.f32 %v1963_v41, %v1963_v41  ;;  %356 = vst.msk [vmem:[#allocation3 + $0x58] sm:$0xff] %vm344_vm1, %v1770_v48  ;;  %357 = vst.msk [vmem:[#allocation3 + $0x60] sm:$0xff] %vm344_vm1, %v1770_v48 }
  0x23   : > { %v261_v46 = vsel %vm215_vm0, %v214_v44, 0.0  ;;  %358 = vst.msk [vmem:[#allocation3 + $0x68] sm:$0xff] %vm344_vm1, %v1770_v48  ;;  %359 = vst.msk [vmem:[#allocation3 + $0x70] sm:$0xff] %vm344_vm1, %v1770_v48 }
  0x24   : > { %v258_v47 = vsel %vm215_vm0, %v213_v45, 0.0  ;;  %360 = vst.msk [vmem:[#allocation3 + $0x78] sm:$0xff] %vm344_vm1, %v1770_v48  ;;  %361 = vst.msk [vmem:[#allocation4] sm:$0xff] %vm344_vm1, %v1771_v49 }
  0x25   : > { %362 = vst.msk [vmem:[#allocation4 + $0x8] sm:$0xff] %vm344_vm1, %v1771_v49  ;;  %363 = vst.msk [vmem:[#allocation4 + $0x10] sm:$0xff] %vm344_vm1, %v1771_v49 }
  0x26   : > { %232 = vadd.xlane.f32.xlu1 %v231_v18  ;;  %229 = vadd.xlane.f32.xlu0 %v228_v19  ;;  %364 = vst.msk [vmem:[#allocation4 + $0x18] sm:$0xff] %vm344_vm1, %v1771_v49  ;;  %365 = vst.msk [vmem:[#allocation4 + $0x20] sm:$0xff] %vm344_vm1, %v1771_v49 }
  0x27   : > { %366 = vst.msk [vmem:[#allocation4 + $0x28] sm:$0xff] %vm344_vm1, %v1771_v49  ;;  %367 = vst.msk [vmem:[#allocation4 + $0x30] sm:$0xff] %vm344_vm1, %v1771_v49 }
  0x28   : > { %368 = vst.msk [vmem:[#allocation4 + $0x38] sm:$0xff] %vm344_vm1, %v1771_v49  ;;  %369 = vst.msk [vmem:[#allocation4 + $0x40] sm:$0xff] %vm344_vm1, %v1771_v49 }
  0x29   : > { %370 = vst.msk [vmem:[#allocation4 + $0x48] sm:$0xff] %vm344_vm1, %v1771_v49  ;;  %371 = vst.msk [vmem:[#allocation4 + $0x50] sm:$0xff] %vm344_vm1, %v1771_v49 }
  0x2a   : > { %238 = vadd.xlane.f32.xlu1 %v237_v24  ;;  %235 = vadd.xlane.f32.xlu0 %v234_v25  ;;  %372 = vst.msk [vmem:[#allocation4 + $0x58] sm:$0xff] %vm344_vm1, %v1771_v49  ;;  %373 = vst.msk [vmem:[#allocation4 + $0x60] sm:$0xff] %vm344_vm1, %v1771_v49 }
  0x2b   : > { %374 = vst.msk [vmem:[#allocation4 + $0x68] sm:$0xff] %vm344_vm1, %v1771_v49  ;;  %375 = vst.msk [vmem:[#allocation4 + $0x70] sm:$0xff] %vm344_vm1, %v1771_v49 }
  0x2c   : > { %376 = vst.msk [vmem:[#allocation4 + $0x78] sm:$0xff] %vm344_vm1, %v1771_v49 }
  0x2e   : > { %244 = vadd.xlane.f32.xlu1 %v243_v30  ;;  %241 = vadd.xlane.f32.xlu0 %v240_v31 }
  0x32   : > { %250 = vadd.xlane.f32.xlu1 %v249_v36  ;;  %247 = vadd.xlane.f32.xlu0 %v246_v37 }
  0x36   : > { %256 = vadd.xlane.f32.xlu1 %v255_v42  ;;  %253 = vadd.xlane.f32.xlu0 %v252_v43 }
  0x3a   : > { %262 = vadd.xlane.f32.xlu1 %v261_v46  ;;  %259 = vadd.xlane.f32.xlu0 %v258_v47 }
  0xab   : > { %v224_v50 = vpop.xlane.xlu1 %223  ;;  %v218_v51 = vpop.xlane.xlu0 %217 }
  0xac   : > { %v266_v52 = vmax.f32 %v224_v50, 1e-24  ;;  %v264_v53 = vmax.f32 %v218_v51, 1e-24 }
  0xae   : > { %1512 = vrsqrt.f32 %v266_v52 }
  0xaf   : > { %1514 = vrsqrt.f32 %v264_v53  ;;  %v227_v54 = vpop.xlane.xlu1 %226  ;;  %v221_v55 = vpop.xlane.xlu0 %220 }
  0xb0   : > { %v267_v56 = vmax.f32 %v227_v54, 1e-24  ;;  %v265_v57 = vmax.f32 %v221_v55, 1e-24 }
  0xb2   : > { %1516 = vrsqrt.f32 %v267_v56 }
  0xb3   : > { %1518 = vrsqrt.f32 %v265_v57  ;;  %v233_v58 = vpop.xlane.xlu1 %232  ;;  %v230_v59 = vpop.xlane.xlu0 %229 }
  0xb4   : > { %v269_v60 = vmax.f32 %v233_v58, 1e-24  ;;  %v268_v61 = vmax.f32 %v230_v59, 1e-24 }
  0xb6   : > { %1520 = vrsqrt.f32 %v269_v60 }
  0xb7   : > { %1522 = vrsqrt.f32 %v268_v61  ;;  %v239_v62 = vpop.xlane.xlu1 %238  ;;  %v236_v63 = vpop.xlane.xlu0 %235 }
  0xb8   : > { %v1513_v3 = vpop.eup %1512  ;;  %v271_v4 = vmax.f32 %v239_v62, 1e-24  ;;  %v270_v5 = vmax.f32 %v236_v63, 1e-24 }
  0xb9   : > { %v1515_v7 = vpop.eup %1514  ;;  %v298_v10 = vmul.f32 2.0, %v1513_v3 }
  0xba   : > { %1524 = vrsqrt.f32 %v271_v4  ;;  %v296_v14 = vmul.f32 2.0, %v1515_v7 }
  0xbb   : > { %1526 = vrsqrt.f32 %v270_v5  ;;  %v245_v11 = vpop.xlane.xlu1 %244  ;;  %v242_v12 = vpop.xlane.xlu0 %241  ;;  %v314_v24 = vmul.f32 %v298_v10, %v1878_v0 }
  0xbc   : > { %v1517_v13 = vpop.eup %1516  ;;  %v273_v15 = vmax.f32 %v245_v11, 1e-24  ;;  %v272_v18 = vmax.f32 %v242_v12, 1e-24  ;;  %v312_v31 = vmul.f32 %v296_v14, %v1881_v1 }
  0xbd   : > { %v1519_v19 = vpop.eup %1518  ;;  %v299_v20 = vmul.f32 2.0, %v1517_v13 }
  0xbe   : > { %v297_v21 = vmul.f32 2.0, %v1519_v19  ;;  %1528 = vrsqrt.f32 %v273_v15 }
  0xbf   : > { %v315_v25 = vmul.f32 %v299_v20, %v1884_v2  ;;  %1530 = vrsqrt.f32 %v272_v18  ;;  %v251_v26 = vpop.xlane.xlu1 %250  ;;  %v248_v27 = vpop.xlane.xlu0 %247 }
  0xc0   : > { %v1521_v30 = vpop.eup %1520  ;;  %v313_v32 = vmul.f32 %v297_v21, %v1893_v6  ;;  %v275_v33 = vmax.f32 %v251_v26, 1e-24  ;;  %v274_v36 = vmax.f32 %v248_v27, 1e-24 }
  0xc1   : > { %v1523_v37 = vpop.eup %1522  ;;  %v329_v38 = vpack.c.bf16 %v315_v25, %v314_v24  ;;  %v301_v39 = vmul.f32 2.0, %v1521_v30 }
  0xc2   : > { %v328_v42 = vpack.c.bf16 %v313_v32, %v312_v31  ;;  %v300_v43 = vmul.f32 2.0, %v1523_v37  ;;  %1532 = vrsqrt.f32 %v275_v33 }
  0xc3   : > { %337 = vst.msk [vmem:[#allocation2 + $0x8] sm:$0xff] %vm215_vm0, %v329_v38  ;;  %v317_v0 = vmul.f32 %v301_v39, %v1898_v8  ;;  %1534 = vrsqrt.f32 %v274_v36  ;;  %v257_v2 = vpop.xlane.xlu1 %256  ;;  %v254_v44 = vpop.xlane.xlu0 %253 }
  0xc4   : > { %v1525_v45 = vpop.eup %1524  ;;  %336 = vst.msk [vmem:[#allocation2] sm:$0xff] %vm215_vm0, %v328_v42  ;;  %v316_v1 = vmul.f32 %v300_v43, %v1901_v9  ;;  %v277_v6 = vmax.f32 %v257_v2, 1e-24  ;;  %v276_v46 = vmax.f32 %v254_v44, 1e-24 }
  0xc5   : > { %v1527_v47 = vpop.eup %1526  ;;  %v303_v48 = vmul.f32 2.0, %v1525_v45 }
  0xc6   : > { %v330_v49 = vpack.c.bf16 %v317_v0, %v316_v1  ;;  %v302_v50 = vmul.f32 2.0, %v1527_v47  ;;  %1536 = vrsqrt.f32 %v277_v6 }
  0xc7   : > { %v319_v51 = vmul.f32 %v303_v48, %v1912_v16  ;;  %1538 = vrsqrt.f32 %v276_v46  ;;  %v263_v52 = vpop.xlane.xlu1 %262  ;;  %v260_v8 = vpop.xlane.xlu0 %259 }
  0xc8   : > { %v1529_v53 = vpop.eup %1528  ;;  %338 = vst.msk [vmem:[#allocation2 + $0x10] sm:$0xff] %vm215_vm0, %v330_v49  ;;  %v318_v54 = vmul.f32 %v302_v50, %v1915_v17  ;;  %v279_v55 = vmax.f32 %v263_v52, 1e-24  ;;  %v278_v56 = vmax.f32 %v260_v8, 1e-24 }
  0xc9   : > { %v1531_v9 = vpop.eup %1530  ;;  %v305_v57 = vmul.f32 2.0, %v1529_v53 }
  0xca   : > { %v331_v58 = vpack.c.bf16 %v319_v51, %v318_v54  ;;  %v304_v59 = vmul.f32 2.0, %v1531_v9  ;;  %1540 = vrsqrt.f32 %v279_v55 }
  0xcb   : > { %v321_v60 = vmul.f32 %v305_v57, %v1924_v22  ;;  %1542 = vrsqrt.f32 %v278_v56 }
  0xcc   : > { %v1533_v61 = vpop.eup %1532  ;;  %339 = vst.msk [vmem:[#allocation2 + $0x18] sm:$0xff] %vm215_vm0, %v331_v58  ;;  %v320_v16 = vmul.f32 %v304_v59, %v1927_v23 }
  0xcd   : > { %v1535_v62 = vpop.eup %1534  ;;  %v307_v63 = vmul.f32 2.0, %v1533_v61 }
  0xce   : > { %v332_v3 = vpack.c.bf16 %v321_v60, %v320_v16  ;;  %v306_v4 = vmul.f32 2.0, %v1535_v62 }
  0xcf   : > { %v323_v17 = vmul.f32 %v307_v63, %v1936_v28 }
  0xd0   : > { %v1537_v5 = vpop.eup %1536  ;;  %340 = vst.msk [vmem:[#allocation2 + $0x20] sm:$0xff] %vm215_vm0, %v332_v3  ;;  %v322_v7 = vmul.f32 %v306_v4, %v1939_v29 }
  0xd1   : > { %v1539_v10 = vpop.eup %1538  ;;  %v309_v11 = vmul.f32 2.0, %v1537_v5 }
  0xd2   : > { %v333_v22 = vpack.c.bf16 %v323_v17, %v322_v7  ;;  %v308_v12 = vmul.f32 2.0, %v1539_v10 }
  0xd3   : > { %v325_v13 = vmul.f32 %v309_v11, %v1948_v34 }
  0xd4   : > { %v1541_v14 = vpop.eup %1540  ;;  %341 = vst.msk [vmem:[#allocation2 + $0x28] sm:$0xff] %vm215_vm0, %v333_v22  ;;  %v324_v23 = vmul.f32 %v308_v12, %v1951_v35 }
  0xd5   : > { %v1543_v15 = vpop.eup %1542  ;;  %v311_v18 = vmul.f32 2.0, %v1541_v14 }
  0xd6   : > { %v334_v19 = vpack.c.bf16 %v325_v13, %v324_v23  ;;  %v310_v28 = vmul.f32 2.0, %v1543_v15 }
  0xd7   : > { %v327_v20 = vmul.f32 %v311_v18, %v1960_v40 }
  0xd8   : > { %342 = vst.msk [vmem:[#allocation2 + $0x30] sm:$0xff] %vm215_vm0, %v334_v19  ;;  %v326_v29 = vmul.f32 %v310_v28, %v1963_v41 }
  0xda   : > { %v335_v21 = vpack.c.bf16 %v327_v20, %v326_v29 }
  0xdc   : > { %343 = vst.msk [vmem:[#allocation2 + $0x38] sm:$0xff] %vm215_vm0, %v335_v21 }
  0xdd PF: > { %v2030_v34 = vld [vmem:[%s1873_s17] sm:$0xff]  ;;  %vm409_vm2 = vcmask 523264   ;;  %v2033_v35 = vld [vmem:[%s1873_s17 + $0x10] sm:$0xff]  ;;  %v2036_v40 = vld [vmem:[%s1873_s17 + $0x8] sm:$0xff]  ;;  %s1349_s23 = sshll.u32 %s1756_s13, 7  ;;  %s1350_s24 = sshll.u32 %s1752_s12, 7 }
  0xde   : > { %v393_v41 = vmul.f32 %v2030_v34, %v2030_v34  ;;  %v395_v24 = vmul.f32 %v2033_v35, %v2033_v35  ;;  %v394_v25 = vmul.f32 %v2036_v40, %v2036_v40  ;;  %v2045_v26 = vld [vmem:[%s1873_s17 + $0x18] sm:$0xff]  ;;  %v2050_v30 = vld [vmem:[%s1873_s17 + $0x28] sm:$0xff]  ;;  %v2053_v31 = vld [vmem:[%s1873_s17 + $0x20] sm:$0xff]  ;;  %p1351_p1 = scmp.ne.s32.totalorder %s1752_s12, 1 }
  0xdf   : > { %v396_v27 = vmul.f32 %v2045_v26, %v2045_v26  ;;  %v398_v38 = vmul.f32 %v2050_v30, %v2050_v30  ;;  %v397_v39 = vmul.f32 %v2053_v31, %v2053_v31  ;;  %v2064_v42 = vld [vmem:[%s1873_s17 + $0x38] sm:$0xff]  ;;  %v2067_v43 = vld [vmem:[%s1873_s17 + $0x30] sm:$0xff]  ;;  %v2076_v1 = vld [vmem:[%s1873_s17 + $0x48] sm:$0xff] }
  0xe0   : > { %v410_v32 = vsel %vm409_vm2, %v393_v41, 0.0  ;;  %v416_v33 = vsel %vm409_vm2, %v395_v24, 0.0  ;;  %v413_v36 = vsel %vm409_vm2, %v394_v25, 0.0  ;;  %v400_v44 = vmul.f32 %v2064_v42, %v2064_v42  ;;  %v2079_v6 = vld [vmem:[%s1873_s17 + $0x40] sm:$0xff]  ;;  %v2088_v50 = vld [vmem:[%s1873_s17 + $0x58] sm:$0xff]  ;;  %v2091_v51 = vld [vmem:[%s1873_s17 + $0x50] sm:$0xff] }
  0xe1   : > { %411 = vadd.xlane.f32.xlu0 %v410_v32  ;;  %417 = vadd.xlane.f32.xlu1 %v416_v33  ;;  %v419_v37 = vsel %vm409_vm2, %v396_v27, 0.0  ;;  %v425_v0 = vsel %vm409_vm2, %v398_v38, 0.0  ;;  %v422_v2 = vsel %vm409_vm2, %v397_v39, 0.0  ;;  %v399_v45 = vmul.f32 %v2067_v43, %v2067_v43  ;;  %v2100_v55 = vld [vmem:[%s1873_s17 + $0x68] sm:$0xff]  ;;  %v2103_v56 = vld [vmem:[%s1873_s17 + $0x60] sm:$0xff]  ;;  %v2112_v60 = vld [vmem:[%s1873_s17 + $0x78] sm:$0xff] }
  0xe2   : > { %v431_v46 = vsel %vm409_vm2, %v400_v44, 0.0  ;;  %v402_v48 = vmul.f32 %v2076_v1, %v2076_v1  ;;  %v401_v49 = vmul.f32 %v2079_v6, %v2079_v6  ;;  %v404_v53 = vmul.f32 %v2088_v50, %v2088_v50  ;;  %v2115_v61 = vld [vmem:[%s1873_s17 + $0x70] sm:$0xff]  ;;  %v514_v5 = vld [vmem:[#allocation2] sm:$0xff] }
  0xe3   : > { %v428_v47 = vsel %vm409_vm2, %v399_v45, 0.0  ;;  %v403_v54 = vmul.f32 %v2091_v51, %v2091_v51  ;;  %v406_v58 = vmul.f32 %v2100_v55, %v2100_v55  ;;  %v405_v59 = vmul.f32 %v2103_v56, %v2103_v56  ;;  %1388 = vmatprep.mubr.msk.bf16.mxu0 %vm409_vm2, %v514_v5  ;;  %v518_v7 = vld [vmem:[#allocation2 + $0x20] sm:$0xff] }
  0xe4   : > { %v437_v52 = vsel %vm409_vm2, %v402_v48, 0.0  ;;  %v434_v8 = vsel %vm409_vm2, %v401_v49, 0.0  ;;  %v443_v9 = vsel %vm409_vm2, %v404_v53, 0.0  ;;  %v408_v63 = vmul.f32 %v2112_v60, %v2112_v60  ;;  %1396 = vmatprep.mubr.msk.bf16.mxu1 %vm409_vm2, %v518_v7 }
  0xe5   : > { %414 = vadd.xlane.f32.xlu0 %v413_v36  ;;  %420 = vadd.xlane.f32.xlu1 %v419_v37  ;;  %v440_v57 = vsel %vm409_vm2, %v403_v54, 0.0  ;;  %v449_v16 = vsel %vm409_vm2, %v406_v58, 0.0  ;;  %v446_v62 = vsel %vm409_vm2, %v405_v59, 0.0  ;;  %v407_v3 = vmul.f32 %v2115_v61, %v2115_v61 }
  0xe6   : > { %v455_v4 = vsel %vm409_vm2, %v408_v63, 0.0 }
  0xe7   : > { %v452_v17 = vsel %vm409_vm2, %v407_v3, 0.0 }
  0xe9   : > { %426 = vadd.xlane.f32.xlu1 %v425_v0  ;;  %423 = vadd.xlane.f32.xlu0 %v422_v2 }
  0xed   : > { %432 = vadd.xlane.f32.xlu1 %v431_v46  ;;  %429 = vadd.xlane.f32.xlu0 %v428_v47 }
  0xf1   : > { %438 = vadd.xlane.f32.xlu1 %v437_v52  ;;  %435 = vadd.xlane.f32.xlu0 %v434_v8 }
  0xf5   : > { %444 = vadd.xlane.f32.xlu1 %v443_v9  ;;  %441 = vadd.xlane.f32.xlu0 %v440_v57 }
  0xf9   : > { %450 = vadd.xlane.f32.xlu1 %v449_v16  ;;  %447 = vadd.xlane.f32.xlu0 %v446_v62 }
  0xfd   : > { %456 = vadd.xlane.f32.xlu1 %v455_v4  ;;  %453 = vadd.xlane.f32.xlu0 %v452_v17 }
 0x16e   : > { %v412_v10 = vpop.xlane.xlu0 %411  ;;  %v418_v11 = vpop.xlane.xlu1 %417 }
 0x16f   : > { %v458_v22 = vmax.f32 %v412_v10, 1e-24  ;;  %v460_v12 = vmax.f32 %v418_v11, 1e-24 }
 0x171   : > { %1546 = vrsqrt.f32 %v460_v12 }
 0x172   : > { %v415_v13 = vpop.xlane.xlu0 %414  ;;  %v421_v14 = vpop.xlane.xlu1 %420  ;;  %1548 = vrsqrt.f32 %v458_v22 }
 0x173   : > { %v459_v23 = vmax.f32 %v415_v13, 1e-24  ;;  %v461_v15 = vmax.f32 %v421_v14, 1e-24 }
 0x175   : > { %1550 = vrsqrt.f32 %v459_v23 }
 0x176   : > { %1552 = vrsqrt.f32 %v461_v15  ;;  %v427_v18 = vpop.xlane.xlu1 %426  ;;  %v424_v19 = vpop.xlane.xlu0 %423 }
 0x177   : > { %v463_v28 = vmax.f32 %v427_v18, 1e-24  ;;  %v462_v20 = vmax.f32 %v424_v19, 1e-24 }
 0x179   : > { %1554 = vrsqrt.f32 %v463_v28 }
 0x17a   : > { %1556 = vrsqrt.f32 %v462_v20  ;;  %v433_v29 = vpop.xlane.xlu1 %432  ;;  %v430_v21 = vpop.xlane.xlu0 %429 }
 0x17b   : > { %v1547_v41 = vpop.eup %1546  ;;  %v465_v24 = vmax.f32 %v433_v29, 1e-24  ;;  %v464_v27 = vmax.f32 %v430_v21, 1e-24 }
 0x17c   : > { %v1549_v25 = vpop.eup %1548  ;;  %v492_v33 = vmul.f32 %v1547_v41, %v2033_v35 }
 0x17d   : > { %v490_v37 = vmul.f32 %v1549_v25, %v2030_v34  ;;  %1558 = vrsqrt.f32 %v465_v24 }
 0x17e   : > { %1560 = vrsqrt.f32 %v464_v27  ;;  %v439_v0 = vpop.xlane.xlu1 %438  ;;  %v436_v44 = vpop.xlane.xlu0 %435 }
 0x17f   : > { %v1551_v32 = vpop.eup %1550  ;;  %v467_v48 = vmax.f32 %v439_v0, 1e-24  ;;  %v466_v34 = vmax.f32 %v436_v44, 1e-24  ;;  %v2180_v44 = vstv %s1349_s23 }
 0x180   : > { %v1553_v36 = vpop.eup %1552  ;;  %v491_v38 = vmul.f32 %v1551_v32, %v2036_v40  ;;  %v515_v32 = vld [vmem:[#allocation2 + $0x8] sm:$0xff] }
 0x181   : > { %v493_v39 = vmul.f32 %v1553_v36, %v2045_v26  ;;  %1562 = vrsqrt.f32 %v467_v48  ;;  %v517_v36 = vld [vmem:[#allocation2 + $0x18] sm:$0xff] }
 0x182   : > { %v506_v2 = vpack.c.bf16 %v491_v38, %v490_v37  ;;  %1564 = vrsqrt.f32 %v466_v34  ;;  %v445_v49 = vpop.xlane.xlu1 %444  ;;  %v442_v53 = vpop.xlane.xlu0 %441  ;;  %v521_v37 = vld [vmem:[#allocation2 + $0x38] sm:$0xff]  ;;  %v668_v38 = vlaneseq }
 0x183   : > { %v1555_v45 = vpop.eup %1554  ;;  %v507_v46 = vpack.c.bf16 %v493_v39, %v492_v33  ;;  %v469_v57 = vmax.f32 %v445_v49, 1e-24  ;;  %v468_v58 = vmax.f32 %v442_v53, 1e-24  ;;  %v519_v33 = vld [vmem:[#allocation2 + $0x28] sm:$0xff] }
 0x184   : > { %v1557_v47 = vpop.eup %1556  ;;  %1420 = vmatprep.subr.msk.bf16.mxu0 %vm409_vm2, %v506_v2  ;;  %1421 = vmatprep.subr.msk.bf16.mxu1 %vm409_vm2, %v506_v2  ;;  %v547_v35 = vsel %vm409_vm2, %v506_v2, 0  ;;  %v495_v26 = vmul.f32 %v1555_v45, %v2050_v30  ;;  %v2173_v39 = vshrl.u32 %v668_v38, 7  ;;  %v704_v2 = vand.u32 127, %v668_v38 }
 0x185   : > { %1373 = vmatpush3.bf16.xpose.msra.mxu0 %v547_v35  ;;  %1412 = vmatpush3.bf16.xpose.msra.mxu1 %v547_v35  ;;  %v494_v40 = vmul.f32 %v1557_v47, %v2053_v31  ;;  %v550_v9 = vsel %vm409_vm2, %v507_v46, 0  ;;  %1566 = vrsqrt.f32 %v469_v57  ;;  %v705_v45 = vstv %s1350_s24 }
 0x186   : > { %1422 = vmatprep.subr.msk.bf16.mxu0 %vm409_vm2, %v507_v46  ;;  %1423 = vmatprep.subr.msk.bf16.mxu1 %vm409_vm2, %v507_v46  ;;  %1568 = vrsqrt.f32 %v468_v58  ;;  %v451_v59 = vpop.xlane.xlu1 %450  ;;  %v448_v3 = vpop.xlane.xlu0 %447  ;;  %v671_v0 = vadd.s32 16, %v2173_v39  ;;  %v672_v46 = vadd.s32 24, %v2173_v39  ;;  %v679_v47 = vadd.s32 80, %v2173_v39 }
 0x187   : > { %v1559_v52 = vpop.eup %1558  ;;  %v508_v8 = vpack.c.bf16 %v495_v26, %v494_v40  ;;  %v471_v17 = vmax.f32 %v451_v59, 1e-24  ;;  %v470_v5 = vmax.f32 %v448_v3, 1e-24  ;;  %v2185_v48 = vadd.s32 %v705_v45, %v704_v2 }
 0x188   : > { %v1561_v54 = vpop.eup %1560  ;;  %v497_v30 = vmul.f32 %v1559_v52, %v2064_v42  ;;  %v688_v35 = vadd.s32 %v2180_v44, %v671_v0  ;;  %v689_v34 = vadd.s32 %v2180_v44, %v672_v46  ;;  %v696_v40 = vadd.s32 %v2180_v44, %v679_v47 }
 0x189   : > { %v496_v31 = vmul.f32 %v1561_v54, %v2067_v43  ;;  %v553_v62 = vsel %vm409_vm2, %v508_v8, 0  ;;  %1570 = vrsqrt.f32 %v471_v17  ;;  %v680_v26 = vadd.s32 88, %v2173_v39 }
 0x18a   : > { %1572 = vrsqrt.f32 %v470_v5  ;;  %v457_v7 = vpop.xlane.xlu1 %456  ;;  %v454_v12 = vpop.xlane.xlu0 %453  ;;  %vm709_vm3 = vcmp.eq.s32.totalorder %v688_v35, %v2185_v48  ;;  %vm710_vm4 = vcmp.eq.s32.totalorder %v689_v34, %v2185_v48  ;;  %vm717_vm5 = vcmp.eq.s32.totalorder %v696_v40, %v2185_v48  ;;  %v2281_v35 = vld [vmem:[#allocation3 + $0x18] sm:$0xff]  ;;  %v2286_v40 = vld [vmem:[#allocation3 + $0x50] sm:$0xff] }
 0x18b   : > { %v1563_v16 = vpop.eup %1562  ;;  %v509_v63 = vpack.c.bf16 %v497_v30, %v496_v31  ;;  %v473_v14 = vmax.f32 %v457_v7, 1e-24  ;;  %v472_v23 = vmax.f32 %v454_v12, 1e-24  ;;  %v670_v53 = vadd.s32 8, %v2173_v39 }
 0x18c   : > { %v1565_v4 = vpop.eup %1564  ;;  %v499_v42 = vmul.f32 %v1563_v16, %v2076_v1  ;;  %v686_v30 = vadd.s32 %v2180_v44, %v2173_v39  ;;  %v677_v59 = vadd.s32 64, %v2173_v39  ;;  %v678_v17 = vadd.s32 72, %v2173_v39 }
 0x18d   : > { %1375 = vmatpush3.bf16.xpose.msra.mxu0 %v550_v9  ;;  %1413 = vmatpush3.bf16.xpose.msra.mxu1 %v550_v9  ;;  %v498_v43 = vmul.f32 %v1565_v4, %v2079_v6  ;;  %v556_v11 = vsel %vm409_vm2, %v509_v63, 0  ;;  %1574 = vrsqrt.f32 %v473_v14  ;;  %v687_v4 = vadd.s32 %v2180_v44, %v670_v53 }
 0x18e   : > { %1424 = vmatprep.subr.msk.bf16.mxu0 %vm409_vm2, %v508_v8  ;;  %1425 = vmatprep.subr.msk.bf16.mxu1 %vm409_vm2, %v508_v8  ;;  %1576 = vrsqrt.f32 %v472_v23  ;;  %v697_v8 = vadd.s32 %v2180_v44, %v680_v26  ;;  %v675_v5 = vadd.s32 48, %v2173_v39  ;;  %vm707_vm7 = vcmp.eq.s32.totalorder %v686_v30, %v2185_v48 }
 0x18f   : > { %v1567_v10 = vpop.eup %1566  ;;  %v510_v22 = vpack.c.bf16 %v499_v42, %v498_v43  ;;  %v694_v43 = vadd.s32 %v2180_v44, %v677_v59  ;;  %v676_v42 = vadd.s32 56, %v2173_v39  ;;  %vm708_vm8 = vcmp.eq.s32.totalorder %v687_v4, %v2185_v48 }
 0x190   : > { %v1569_v13 = vpop.eup %1568  ;;  %v501_v1 = vmul.f32 %v1567_v10, %v2088_v50  ;;  %vm718_vm6 = vcmp.eq.s32.totalorder %v697_v8, %v2185_v48  ;;  %v695_v10 = vadd.s32 %v2180_v44, %v678_v17  ;;  %v692_v12 = vadd.s32 %v2180_v44, %v675_v5  ;;  %v2296_v8 = vld [vmem:[#allocation3 + $0x58] sm:$0xff]  ;;  %v2324_v5 = vld [vmem:[#allocation3 + $0x40] sm:$0xff] }
 0x191   : > { %v500_v6 = vmul.f32 %v1569_v13, %v2091_v51  ;;  %v559_v18 = vsel %vm409_vm2, %v510_v22, 0  ;;  %v673_v13 = vadd.s32 32, %v2173_v39  ;;  %vm715_vm9 = vcmp.eq.s32.totalorder %v694_v43, %v2185_v48 }
 0x192   : > { %vm716_vm10 = vcmp.eq.s32.totalorder %v695_v10, %v2185_v48  ;;  %vm713_vm11 = vcmp.eq.s32.totalorder %v692_v12, %v2185_v48 }
 0x193   : > { %v1571_v15 = vpop.eup %1570  ;;  %v511_v19 = vpack.c.bf16 %v501_v1, %v500_v6 }
 0x194   : > { %v1573_v28 = vpop.eup %1572  ;;  %v503_v29 = vmul.f32 %v1571_v15, %v2100_v55  ;;  %v693_v15 = vadd.s32 %v2180_v44, %v676_v42 }
 0x195   : > { %1377 = vmatpush3.bf16.xpose.msra.mxu0 %v553_v62  ;;  %1414 = vmatpush3.bf16.xpose.msra.mxu1 %v553_v62  ;;  %v502_v20 = vmul.f32 %v1573_v28, %v2103_v56  ;;  %v562_v50 = vsel %vm409_vm2, %v511_v19, 0 }
 0x196   : > { %1426 = vmatprep.subr.msk.bf16.mxu0 %vm409_vm2, %v509_v63  ;;  %1427 = vmatprep.subr.msk.bf16.mxu1 %vm409_vm2, %v509_v63  ;;  %vm714_vm12 = vcmp.eq.s32.totalorder %v693_v15, %v2185_v48  ;;  %v2354_v15 = vld [vmem:[#allocation3 + $0x38] sm:$0xff] }
 0x197   : > { %v1575_v51 = vpop.eup %1574  ;;  %v512_v21 = vpack.c.bf16 %v503_v29, %v502_v20 }
 0x198   : > { %v1577_v41 = vpop.eup %1576  ;;  %v505_v25 = vmul.f32 %v1575_v51, %v2112_v60  ;;  %v520_v60 = vld [vmem:[#allocation2 + $0x30] sm:$0xff]  ;;  %v690_v51 = vadd.s32 %v2180_v44, %v673_v13 }
 0x199   : > { %v504_v24 = vmul.f32 %v1577_v41, %v2115_v61  ;;  %v565_v27 = vsel %vm409_vm2, %v512_v21, 0  ;;  %v516_v61 = vld [vmem:[#allocation2 + $0x10] sm:$0xff] }
 0x19a   : > { %vm711_vm13 = vcmp.eq.s32.totalorder %v690_v51, %v2185_v48  ;;  %v2363_v51 = vld [vmem:[#allocation3 + $0x20] sm:$0xff] }
 0x19b   : > { %v513_v56 = vpack.c.bf16 %v505_v25, %v504_v24 }
 0x19d   : > { %1379 = vmatpush3.bf16.xpose.msra.mxu0 %v556_v11  ;;  %1415 = vmatpush3.bf16.xpose.msra.mxu1 %v556_v11  ;;  %v568_v55 = vsel %vm409_vm2, %v513_v56, 0 }
 0x19e   : > { %1428 = vmatprep.subr.msk.bf16.mxu0 %vm409_vm2, %v510_v22  ;;  %1429 = vmatprep.subr.msk.bf16.mxu1 %vm409_vm2, %v510_v22 }
 0x1a5   : > { %1381 = vmatpush3.bf16.xpose.msra.mxu0 %v559_v18  ;;  %1416 = vmatpush3.bf16.xpose.msra.mxu1 %v559_v18 }
 0x1a6   : > { %1430 = vmatprep.subr.msk.bf16.mxu0 %vm409_vm2, %v511_v19  ;;  %1431 = vmatprep.subr.msk.bf16.mxu1 %vm409_vm2, %v511_v19  ;;  %v684_v19 = vadd.s32 120, %v2173_v39 }
 0x1a8   : > { %v701_v41 = vadd.s32 %v2180_v44, %v684_v19 }
 0x1aa   : > { %vm722_vm14 = vcmp.eq.s32.totalorder %v701_v41, %v2185_v48 }
 0x1ad   : > { %1383 = vmatpush3.bf16.xpose.msra.mxu0 %v562_v50  ;;  %1417 = vmatpush3.bf16.xpose.msra.mxu1 %v562_v50  ;;  %v681_v50 = vadd.s32 96, %v2173_v39 }
 0x1ae   : > { %1432 = vmatprep.subr.msk.bf16.mxu0 %vm409_vm2, %v512_v21  ;;  %1433 = vmatprep.subr.msk.bf16.mxu1 %vm409_vm2, %v512_v21 }
 0x1b5   : > { %1385 = vmatpush3.bf16.xpose.msra.mxu0 %v565_v27  ;;  %1418 = vmatpush3.bf16.xpose.msra.mxu1 %v565_v27  ;;  %v674_v27 = vadd.s32 40, %v2173_v39 }
 0x1b6   : > { %1434 = vmatprep.subr.msk.bf16.mxu0 %vm409_vm2, %v513_v56  ;;  %1435 = vmatprep.subr.msk.bf16.mxu1 %vm409_vm2, %v513_v56  ;;  %v698_v56 = vadd.s32 %v2180_v44, %v681_v50 }
 0x1b8   : > { %vm719_vm15 = vcmp.eq.s32.totalorder %v698_v56, %v2185_v48 }
 0x1bd   : > { %1387 = vmatpush3.bf16.xpose.msra.mxu0 %v568_v55  ;;  %1419 = vmatpush3.bf16.xpose.msra.mxu1 %v568_v55  ;;  %v683_v55 = vadd.s32 112, %v2173_v39 }
 0x1c4   : > { %1389 = vmatmul.mubr.msk.bf16.vlgmr.msra.gmra.mrb[0].mxu0 %vm409_vm2, %v515_v32  ;;  %1397 = vmatmul.mubr.msk.bf16.vlgmr.msra.gmra.mrb[0].mxu1 %vm409_vm2, %v519_v33  ;;  %v1772_v33 = vmov 0  }
 0x1c5   : > { %1392 = vmatprep.mubr.msk.bf16.mxu0 %vm409_vm2, %v516_v61  ;;  %1400 = vmatprep.mubr.msk.bf16.mxu1 %vm409_vm2, %v520_v60  ;;  %v682_v61 = vadd.s32 104, %v2173_v39 }
 0x1c6   : > { %1544 = vset.pattern.permute.xlu1 %v1772_v33  ;;  %1545 = vset.pattern.permute.xlu0 %v1772_v33 }
 0x1c7   : > { %v699_v0 = vadd.s32 %v2180_v44, %v682_v61 }
 0x1cc   : > { %1393 = vmatmul.mubr.msk.bf16.gmra.mrb[4].mxu0 %vm409_vm2, %v517_v36  ;;  %1401 = vmatmul.mubr.msk.bf16.gmra.mrb[4].mxu1 %vm409_vm2, %v521_v37  ;;  %v691_v36 = vadd.s32 %v2180_v44, %v674_v27  ;;  %v700_v37 = vadd.s32 %v2180_v44, %v683_v55  ;;  %vm720_vm2 = vcmp.eq.s32.totalorder %v699_v0, %v2185_v48  ;;  %v2279_v44 = vld [vmem:[#allocation3 + $0x10] sm:$0xff]  ;;  %v2374_v27 = vld [vmem:[#allocation3 + $0x78] sm:$0xff] }
 0x1ce   : > { %vm712_vm0 = vcmp.eq.s32.totalorder %v691_v36, %v2185_v48  ;;  %vm721_vm1 = vcmp.eq.s32.totalorder %v700_v37, %v2185_v48  ;;  %v2383_v36 = vld [vmem:[#allocation3 + $0x60] sm:$0xff] }
 0x297   : > { %v1390_v49 = vpop.f32.mrb[0].mxu0  ;;  %v1398_v52 = vpop.f32.mrb[0].mxu1 }
 0x298   : > { %v604_v54 = vpop.f32.mrb[1].mxu0  ;;  %v636_v9 = vpop.f32.mrb[1].mxu1  ;;  %v2195_v57 = vsel %vm709_vm3, -1e+08, %v1390_v49  ;;  %v2203_v3 = vsel %vm717_vm5, -1e+08, %v1398_v52 }
 0x299   : > { %759 = vmax.xlane.f32.xlu0 %v2195_v57  ;;  %v1391_v58 = vpop.f32.mrb[2].mxu0  ;;  %v1399_v31 = vpop.f32.mrb[2].mxu1  ;;  %v2221_v14 = vsel %vm707_vm7, -1e+08, %v604_v54  ;;  %v2234_v21 = vsel %vm715_vm9, -1e+08, %v636_v9 }
 0x29a   : > { %v607_v16 = vpop.f32.mrb[3].mxu0  ;;  %v639_v62 = vpop.f32.mrb[3].mxu1  ;;  %v2201_v63 = vsel %vm710_vm4, -1e+08, %v1391_v58  ;;  %v2214_v7 = vsel %vm718_vm6, -1e+08, %v1399_v31 }
 0x29b   : > { %761 = vmax.xlane.f32.xlu1 %v2201_v63  ;;  %v2227_v28 = vsel %vm708_vm8, -1e+08, %v607_v16  ;;  %v2239_v24 = vsel %vm716_vm10, -1e+08, %v639_v62  ;;  %vm1059_vm3 = vcmask 7168   ;;  %v2305_v58 = vld [vmem:[#allocation3] sm:$0xff] }
 0x29c   : > { %v2315_v16 = vld [vmem:[#allocation3 + $0x8] sm:$0xff] }
 0x29d   : > { %775 = vmax.xlane.f32.xlu0 %v2203_v3 }
 0x29f   : > { %777 = vmax.xlane.f32.xlu1 %v2214_v7  ;;  %v1394_v11 = vpop.f32.mrb[4].mxu0  ;;  %v1402_v22 = vpop.f32.mrb[4].mxu1 }
 0x2a0   : > { %v620_v23 = vpop.f32.mrb[5].mxu0  ;;  %v652_v6 = vpop.f32.mrb[5].mxu1  ;;  %v2241_v25 = vsel %vm713_vm11, -1e+08, %v1394_v11  ;;  %v2272_v45 = vsel %vm721_vm1, -1e+08, %v1402_v22 }
 0x2a1   : > { %755 = vmax.xlane.f32.xlu0 %v2221_v14  ;;  %v1395_v1 = vpop.f32.mrb[6].mxu0  ;;  %v1403_v18 = vpop.f32.mrb[6].mxu1  ;;  %v2253_v60 = vsel %vm711_vm13, -1e+08, %v620_v23  ;;  %v2263_v2 = vsel %vm719_vm15, -1e+08, %v652_v6 }
 0x2a2   : > { %v623_v20 = vpop.f32.mrb[7].mxu0  ;;  %v655_v29 = vpop.f32.mrb[7].mxu1  ;;  %v2248_v32 = vsel %vm714_vm12, -1e+08, %v1395_v1  ;;  %v2259_v38 = vsel %vm722_vm14, -1e+08, %v1403_v18 }
 0x2a3   : > { %757 = vmax.xlane.f32.xlu1 %v2227_v28  ;;  %v2270_v39 = vsel %vm712_vm0, -1e+08, %v623_v20  ;;  %v2275_v46 = vsel %vm720_vm2, -1e+08, %v655_v29  ;;  %v2334_v11 = vld [vmem:[#allocation3 + $0x48] sm:$0xff]  ;;  %v2343_v23 = vld [vmem:[#allocation3 + $0x30] sm:$0xff] }
 0x2a5   : > { %771 = vmax.xlane.f32.xlu0 %v2234_v21 }
 0x2a7   : > { %773 = vmax.xlane.f32.xlu1 %v2239_v24 }
 0x2a9   : > { %767 = vmax.xlane.f32.xlu0 %v2241_v25 }
 0x2ab   : > { %769 = vmax.xlane.f32.xlu1 %v2248_v32 }
 0x2ad   : > { %763 = vmax.xlane.f32.xlu0 %v2253_v60 }
 0x2af   : > { %785 = vmax.xlane.f32.xlu1 %v2259_v38 }
 0x2b1   : > { %779 = vmax.xlane.f32.xlu0 %v2263_v2 }
 0x2b3   : > { %765 = vmax.xlane.f32.xlu1 %v2270_v39 }
 0x2b5   : > { %783 = vmax.xlane.f32.xlu0 %v2272_v45 }
 0x2b7   : > { %781 = vmax.xlane.f32.xlu1 %v2275_v46 }
 0x326   : > { %v760_v47 = vpop.xlane.xlu0 %759 }
 0x327   : > { %v2284_v48 = vmax.f32 %v2279_v44, %v760_v47  ;;  %v2393_v47 = vld [vmem:[#allocation3 + $0x28] sm:$0xff] }
 0x328   : > { %v762_v34 = vpop.xlane.xlu1 %761 }
 0x329   : > { %v821_v26 = vsub.f32 %v2279_v44, %v2284_v48  ;;  %1078 = vst.msk [vmem:[#allocation3 + $0x10] sm:$0xff] %vm1059_vm3, %v2284_v48  ;;  %v2293_v49 = vmax.f32 %v2281_v35, %v762_v34  ;;  %895 = vperm.xlu1 %1544, %v2284_v48  }
 0x32a   : > { %v776_v52 = vpop.xlane.xlu0 %775 }
 0x32b   : > { %1079 = vst.msk [vmem:[#allocation3 + $0x18] sm:$0xff] %vm1059_vm3, %v2293_v49  ;;  %v2303_v54 = vmax.f32 %v2286_v40, %v776_v52  ;;  %v2601_v44 = vsub.f32 %v2281_v35, %v2293_v49 }
 0x32c   : > { %v778_v9 = vpop.xlane.xlu1 %777 }
 0x32d   : > { %v829_v31 = vsub.f32 %v2286_v40, %v2303_v54  ;;  %1086 = vst.msk [vmem:[#allocation3 + $0x50] sm:$0xff] %vm1059_vm3, %v2303_v54  ;;  %v2312_v30 = vmax.f32 %v2296_v8, %v778_v9  ;;  %935 = vperm.xlu1 %1544, %v2303_v54   ;;  %v841_v48 = vmul.f32 1.442695, %v2601_v44 }
 0x32e   : > { %v756_v59 = vpop.xlane.xlu0 %755 }
 0x32f   : > { %1087 = vst.msk [vmem:[#allocation3 + $0x58] sm:$0xff] %vm1059_vm3, %v2312_v30  ;;  %v2322_v4 = vmax.f32 %v2305_v58, %v756_v59 }
 0x330   : > { %v758_v17 = vpop.xlane.xlu1 %757 }
 0x331   : > { %1076 = vst.msk [vmem:[#allocation3] sm:$0xff] %vm1059_vm3, %v2322_v4  ;;  %v2331_v42 = vmax.f32 %v2315_v16, %v758_v17  ;;  %885 = vperm.xlu0 %1545, %v2322_v4   ;;  %v2402_v17 = vld [vmem:[#allocation3 + $0x70] sm:$0xff] }
 0x332   : > { %v772_v10 = vpop.xlane.xlu0 %771 }
 0x333   : > { %1077 = vst.msk [vmem:[#allocation3 + $0x8] sm:$0xff] %vm1059_vm3, %v2331_v42  ;;  %v2341_v12 = vmax.f32 %v2324_v5, %v772_v10 }
 0x334   : > { %v774_v13 = vpop.xlane.xlu1 %773 }
 0x335   : > { %1084 = vst.msk [vmem:[#allocation3 + $0x40] sm:$0xff] %vm1059_vm3, %v2341_v12  ;;  %v2350_v1 = vmax.f32 %v2334_v11, %v774_v13  ;;  %940 = vperm.xlu0 %1545, %v2312_v30   ;;  %925 = vperm.xlu1 %1544, %v2341_v12  }
 0x336   : > { %v768_v18 = vpop.xlane.xlu0 %767 }
 0x337   : > { %1085 = vst.msk [vmem:[#allocation3 + $0x48] sm:$0xff] %vm1059_vm3, %v2350_v1  ;;  %v2361_v20 = vmax.f32 %v2343_v23, %v768_v18  ;;  %v2412_v18 = vld [vmem:[#allocation3 + $0x68] sm:$0xff] }
 0x338   : > { %v770_v29 = vpop.xlane.xlu1 %769 }
 0x339   : > { %v2366_v50 = vmax.f32 %v2354_v15, %v770_v29  ;;  %1082 = vst.msk [vmem:[#allocation3 + $0x30] sm:$0xff] %vm1059_vm3, %v2361_v20  ;;  %930 = vperm.xlu0 %1545, %v2350_v1   ;;  %900 = vperm.xlu1 %1544, %v2293_v49  }
 0x33a   : > { %v764_v56 = vpop.xlane.xlu0 %763 }
 0x33b   : > { %1083 = vst.msk [vmem:[#allocation3 + $0x38] sm:$0xff] %vm1059_vm3, %v2366_v50  ;;  %v2381_v33 = vmax.f32 %v2363_v51, %v764_v56 }
 0x33c   : > { %v786_v61 = vpop.xlane.xlu1 %785 }
 0x33d   : > { %v2386_v37 = vmax.f32 %v2374_v27, %v786_v61  ;;  %1080 = vst.msk [vmem:[#allocation3 + $0x20] sm:$0xff] %vm1059_vm3, %v2381_v33  ;;  %890 = vperm.xlu1 %1544, %v2331_v42  }
 0x33e   : > { %v780_v34 = vpop.xlane.xlu0 %779 }
 0x33f   : > { %1091 = vst.msk [vmem:[#allocation3 + $0x78] sm:$0xff] %vm1059_vm3, %v2386_v37  ;;  %v2400_v9 = vmax.f32 %v2383_v36, %v780_v34 }
 0x340   : > { %v766_v59 = vpop.xlane.xlu1 %765 }
 0x341   : > { %v2405_v10 = vmax.f32 %v2393_v47, %v766_v59  ;;  %1088 = vst.msk [vmem:[#allocation3 + $0x60] sm:$0xff] %vm1059_vm3, %v2400_v9  ;;  %915 = vperm.xlu1 %1544, %v2361_v20  }
 0x342   : > { %v784_v29 = vpop.xlane.xlu0 %783 }
 0x343   : > { %1081 = vst.msk [vmem:[#allocation3 + $0x28] sm:$0xff] %vm1059_vm3, %v2405_v10  ;;  %v2419_v61 = vmax.f32 %v2402_v17, %v784_v29 }
 0x344   : > { %v782_v34 = vpop.xlane.xlu1 %781 }
 0x345   : > { %v2422_v59 = vmax.f32 %v2412_v18, %v782_v34  ;;  %1090 = vst.msk [vmem:[#allocation3 + $0x70] sm:$0xff] %vm1059_vm3, %v2419_v61  ;;  %905 = vperm.xlu1 %1544, %v2381_v33  }
 0x347   : > { %1089 = vst.msk [vmem:[#allocation3 + $0x68] sm:$0xff] %vm1059_vm3, %v2422_v59  ;;  %950 = vperm.xlu0 %1545, %v2422_v59  }
 0x349   : > { %945 = vperm.xlu1 %1544, %v2400_v9  }
 0x34b   : > { %960 = vperm.xlu0 %1545, %v2386_v37  }
 0x34d   : > { %920 = vperm.xlu1 %1544, %v2366_v50  }
 0x351   : > { %910 = vperm.xlu1 %1544, %v2405_v10  }
 0x355   : > { %955 = vperm.xlu1 %1544, %v2419_v61  }
 0x3a8   : > { %v896_v29 = vpop.permute.xlu1 %895 }
 0x3a9   : > { %v965_v34 = vsub.f32 %v2195_v57, %v896_v29 }
 0x3ab   : > { %v983_v52 = vmul.f32 1.442695, %v965_v34 }
 0x3ac   : > { %v936_v56 = vpop.permute.xlu1 %935 }
 0x3ad   : > { %1578 = vpow2.f32 %v983_v52  ;;  %v973_v55 = vsub.f32 %v2203_v3, %v936_v56 }
 0x3af   : > { %v999_v13 = vmul.f32 1.442695, %v973_v55 }
 0x3b0   : > { %v886_v0 = vpop.permute.xlu0 %885 }
 0x3b1   : > { %1580 = vpow2.f32 %v999_v13  ;;  %v963_v19 = vsub.f32 %v2221_v14, %v886_v0 }
 0x3b3   : > { %v979_v41 = vmul.f32 1.442695, %v963_v19 }
 0x3b4   : > { %v926_v62 = vpop.permute.xlu1 %925  ;;  %v941_v22 = vpop.permute.xlu0 %940 }
 0x3b5   : > { %1582 = vpow2.f32 %v979_v41  ;;  %v971_v53 = vsub.f32 %v2234_v21, %v926_v62  ;;  %v974_v52 = vsub.f32 %v2214_v7, %v941_v22 }
 0x3b7   : > { %v1579_v6 = vpop.eup %1578  ;;  %v995_v43 = vmul.f32 1.442695, %v971_v53  ;;  %v1001_v41 = vmul.f32 1.442695, %v974_v52 }
 0x3b8   : > { %1015 = vadd.xlane.f32.xlu0 %v1579_v6  ;;  %v901_v57 = vpop.permute.xlu1 %900  ;;  %v931_v55 = vpop.permute.xlu0 %930 }
 0x3b9   : > { %v966_v29 = vsub.f32 %v2201_v63, %v901_v57  ;;  %1584 = vpow2.f32 %v995_v43  ;;  %v972_v0 = vsub.f32 %v2239_v24, %v931_v55 }
 0x3bb   : > { %v1581_v3 = vpop.eup %1580  ;;  %v985_v13 = vmul.f32 1.442695, %v966_v29  ;;  %v997_v7 = vmul.f32 1.442695, %v972_v0 }
 0x3bc   : > { %1031 = vadd.xlane.f32.xlu0 %v1581_v3  ;;  %v891_v14 = vpop.permute.xlu1 %890 }
 0x3bd   : > { %v964_v19 = vsub.f32 %v2227_v28, %v891_v14  ;;  %1586 = vpow2.f32 %v985_v13 }
 0x3bf   : > { %v1583_v21 = vpop.eup %1582  ;;  %v981_v53 = vmul.f32 1.442695, %v964_v19 }
 0x3c0   : > { %1011 = vadd.xlane.f32.xlu1 %v1583_v21  ;;  %v916_v62 = vpop.permute.xlu1 %915 }
 0x3c1   : > { %1588 = vpow2.f32 %v981_v53  ;;  %v969_v63 = vsub.f32 %v2241_v25, %v916_v62 }
 0x3c2   : > { %1590 = vpow2.f32 %v1001_v41 }
 0x3c3   : > { %v991_v43 = vmul.f32 1.442695, %v969_v63  ;;  %v1585_v22 = vpop.eup %1584 }
 0x3c4   : > { %v906_v6 = vpop.permute.xlu1 %905  ;;  %1027 = vadd.xlane.f32.xlu0 %v1585_v22 }
 0x3c5   : > { %1592 = vpow2.f32 %v991_v43  ;;  %v967_v28 = vsub.f32 %v2253_v60, %v906_v6 }
 0x3c6   : > { %1594 = vpow2.f32 %v997_v7  ;;  %v951_v3 = vpop.permute.xlu0 %950 }
 0x3c7   : > { %v987_v56 = vmul.f32 1.442695, %v967_v28  ;;  %v1587_v24 = vpop.eup %1586  ;;  %v976_v41 = vsub.f32 %v2275_v46, %v951_v3 }
 0x3c8   : > { %v946_v34 = vpop.permute.xlu1 %945  ;;  %1017 = vadd.xlane.f32.xlu1 %v1587_v24 }
 0x3c9   : > { %1596 = vpow2.f32 %v987_v56  ;;  %v975_v57 = vsub.f32 %v2263_v2, %v946_v34  ;;  %v1005_v63 = vmul.f32 1.442695, %v976_v41  ;;  %v2604_v41 = vsub.f32 %v2343_v23, %v2361_v20 }
 0x3ca   : > { %v961_v21 = vpop.permute.xlu0 %960 }
 0x3cb   : > { %v1589_v29 = vpop.eup %1588  ;;  %v1003_v52 = vmul.f32 1.442695, %v975_v57  ;;  %v978_v43 = vsub.f32 %v2259_v38, %v961_v21  ;;  %v839_v38 = vmul.f32 1.442695, %v821_v26  ;;  %v2599_v57 = vsub.f32 %v2305_v58, %v2322_v4 }
 0x3cc   : > { %v1591_v25 = vpop.eup %1590  ;;  %1013 = vadd.xlane.f32.xlu0 %v1589_v29  ;;  %v921_v55 = vpop.permute.xlu1 %920  ;;  %v2602_v58 = vsub.f32 %v2315_v16, %v2331_v42  ;;  %v2605_v16 = vsub.f32 %v2334_v11, %v2350_v1  ;;  %v806_v11 = vld [vmem:[#allocation4 + $0x18] sm:$0xff]  ;;  %v2607_v1 = vsub.f32 %v2383_v36, %v2400_v9 }
 0x3cd   : > { %1598 = vpow2.f32 %v1003_v52  ;;  %1033 = vadd.xlane.f32.xlu1 %v1591_v25  ;;  %v970_v13 = vsub.f32 %v2248_v32, %v921_v55  ;;  %v1009_v46 = vmul.f32 1.442695, %v978_v43  ;;  %v835_v29 = vmul.f32 1.442695, %v2599_v57  ;;  %v805_v55 = vld [vmem:[#allocation4 + $0x10] sm:$0xff] }
 0x3ce   : > { %v2600_v52 = vsub.f32 %v2324_v5, %v2341_v12  ;;  %v837_v4 = vmul.f32 1.442695, %v2602_v58  ;;  %v2603_v5 = vsub.f32 %v2296_v8, %v2312_v30  ;;  %v853_v42 = vmul.f32 1.442695, %v2605_v16 }
 0x3cf   : > { %v1593_v14 = vpop.eup %1592  ;;  %v993_v60 = vmul.f32 1.442695, %v970_v13  ;;  %v859_v43 = vmul.f32 1.442695, %v2607_v1 }
 0x3d0   : > { %v1595_v19 = vpop.eup %1594  ;;  %1023 = vadd.xlane.f32.xlu0 %v1593_v14  ;;  %v911_v0 = vpop.permute.xlu1 %910  ;;  %v851_v25 = vmul.f32 1.442695, %v2600_v52  ;;  %v857_v12 = vmul.f32 1.442695, %v2603_v5 }
 0x3d1   : > { %1600 = vpow2.f32 %v993_v60  ;;  %1029 = vadd.xlane.f32.xlu1 %v1595_v19  ;;  %v968_v2 = vsub.f32 %v2270_v39, %v911_v0  ;;  %v803_v60 = vld [vmem:[#allocation4] sm:$0xff]  ;;  %v847_v0 = vmul.f32 1.442695, %v2604_v41 }
 0x3d3   : > { %v1597_v53 = vpop.eup %1596  ;;  %v989_v62 = vmul.f32 1.442695, %v968_v2 }
 0x3d4   : > { %1019 = vadd.xlane.f32.xlu0 %v1597_v53  ;;  %v956_v7 = vpop.permute.xlu1 %955  ;;  %v811_v53 = vld [vmem:[#allocation4 + $0x40] sm:$0xff] }
 0x3d5   : > { %1602 = vpow2.f32 %v989_v62  ;;  %v977_v32 = vsub.f32 %v2272_v45, %v956_v7  ;;  %v855_v45 = vmul.f32 1.442695, %v829_v31  ;;  %v813_v31 = vld [vmem:[#allocation4 + $0x50] sm:$0xff]  ;;  %v2606_v62 = vsub.f32 %v2363_v51, %v2381_v33 }
 0x3d6   : > { %1604 = vpow2.f32 %v1005_v63 }
 0x3d7   : > { %v1599_v22 = vpop.eup %1598  ;;  %v1007_v6 = vmul.f32 1.442695, %v977_v32  ;;  %v843_v63 = vmul.f32 1.442695, %v2606_v62  ;;  %v816_v62 = vld [vmem:[#allocation4 + $0x68] sm:$0xff] }
 0x3d8   : > { %1035 = vadd.xlane.f32.xlu0 %v1599_v22 }
 0x3d9   : > { %1606 = vpow2.f32 %v1007_v6 }
 0x3da   : > { %1608 = vpow2.f32 %v1009_v46  ;;  %v804_v46 = vld [vmem:[#allocation4 + $0x8] sm:$0xff] }
 0x3db   : > { %v1601_v28 = vpop.eup %1600  ;;  %1610 = vpow2.f32 %v839_v38 }
 0x3dc   : > { %1025 = vadd.xlane.f32.xlu1 %v1601_v28  ;;  %1612 = vpow2.f32 %v855_v45  ;;  %v814_v28 = vld [vmem:[#allocation4 + $0x58] sm:$0xff]  ;;  %v809_v45 = vld [vmem:[#allocation4 + $0x30] sm:$0xff] }
 0x3dd   : > { %1614 = vpow2.f32 %v835_v29 }
 0x3de   : > { %1616 = vpow2.f32 %v851_v25  ;;  %v812_v25 = vld [vmem:[#allocation4 + $0x48] sm:$0xff] }
 0x3df   : > { %v1603_v39 = vpop.eup %1602  ;;  %1618 = vpow2.f32 %v841_v48 }
 0x3e0   : > { %1021 = vadd.xlane.f32.xlu1 %v1603_v39  ;;  %v1605_v56 = vpop.eup %1604  ;;  %1620 = vpow2.f32 %v837_v4  ;;  %v2608_v39 = vsub.f32 %v2354_v15, %v2366_v50 }
 0x3e1   : > { %1622 = vpow2.f32 %v857_v12 }
 0x3e2   : > { %1624 = vpow2.f32 %v847_v0 }
 0x3e3   : > { %v1607_v24 = vpop.eup %1606  ;;  %1626 = vpow2.f32 %v853_v42 }
 0x3e4   : > { %1037 = vadd.xlane.f32.xlu1 %v1605_v56  ;;  %1039 = vadd.xlane.f32.xlu0 %v1607_v24  ;;  %v1609_v34 = vpop.eup %1608  ;;  %1628 = vpow2.f32 %v843_v63  ;;  %v849_v56 = vmul.f32 1.442695, %v2608_v39 }
 0x3e5   : > { %v1611_v3 = vpop.eup %1610  ;;  %1630 = vpow2.f32 %v859_v43  ;;  %v818_v43 = vld [vmem:[#allocation4 + $0x78] sm:$0xff] }
 0x3e6   : > { %v869_v26 = vmul.f32 %v1611_v3, %v805_v55  ;;  %v1613_v40 = vpop.eup %1612  ;;  %1632 = vpow2.f32 %v849_v56  ;;  %v2609_v3 = vsub.f32 %v2393_v47, %v2405_v10  ;;  %v2611_v47 = vsub.f32 %v2412_v18, %v2422_v59 }
 0x3e7   : > { %v877_v14 = vmul.f32 %v1613_v40, %v813_v31  ;;  %v1615_v35 = vpop.eup %1614  ;;  %v807_v40 = vld [vmem:[#allocation4 + $0x20] sm:$0xff] }
 0x3e8   : > { %1041 = vadd.xlane.f32.xlu1 %v1609_v34  ;;  %v867_v8 = vmul.f32 %v1615_v35, %v803_v60  ;;  %v1617_v2 = vpop.eup %1616  ;;  %v845_v55 = vmul.f32 1.442695, %v2609_v3  ;;  %v861_v10 = vmul.f32 1.442695, %v2611_v47  ;;  %v815_v35 = vld [vmem:[#allocation4 + $0x60] sm:$0xff] }
 0x3e9   : > { %v875_v23 = vmul.f32 %v1617_v2, %v811_v53  ;;  %v1619_v20 = vpop.eup %1618  ;;  %v817_v53 = vld [vmem:[#allocation4 + $0x70] sm:$0xff] }
 0x3ea   : > { %v1621_v22 = vpop.eup %1620  ;;  %v870_v6 = vmul.f32 %v1619_v20, %v806_v11  ;;  %1634 = vpow2.f32 %v845_v55 }
 0x3eb   : > { %v1623_v51 = vpop.eup %1622  ;;  %v868_v34 = vmul.f32 %v1621_v22, %v804_v46 }
 0x3ec   : > { %v1625_v38 = vpop.eup %1624  ;;  %v878_v9 = vmul.f32 %v1623_v51, %v814_v28 }
 0x3ed   : > { %v1627_v57 = vpop.eup %1626  ;;  %v873_v50 = vmul.f32 %v1625_v38, %v809_v45 }
 0x3ee   : > { %v1629_v44 = vpop.eup %1628 }
 0x3ef   : > { %v871_v5 = vmul.f32 %v1629_v44, %v807_v40  ;;  %v1631_v12 = vpop.eup %1630 }
 0x3f0   : > { %v879_v18 = vmul.f32 %v1631_v12, %v815_v35  ;;  %v1633_v59 = vpop.eup %1632  ;;  %v1101_v35 = vld [vmem:[#allocation3 + $0x28] sm:$0xff] (!%p1351_p1) }
 0x3f4   : > { %v1635_v16 = vpop.eup %1634 }
 0x445   : > { %v1016_v54 = vpop.xlane.xlu0 %1015 }
 0x446   : > { %v1045_v13 = vadd.f32 %v1016_v54, %v869_v26  ;;  %v876_v26 = vmul.f32 %v1627_v57, %v812_v25  ;;  %v2610_v54 = vsub.f32 %v2402_v17, %v2419_v61  ;;  %v2612_v17 = vsub.f32 %v2374_v27, %v2386_v37  ;;  %v1096_v25 = vld [vmem:[#allocation3] sm:$0xff] (!%p1351_p1) }
 0x448   : > { %1062 = vst.msk [vmem:[#allocation4 + $0x10] sm:$0xff] %vm1059_vm3, %v1045_v13  ;;  %v863_v31 = vmul.f32 1.442695, %v2610_v54  ;;  %v865_v61 = vmul.f32 1.442695, %v2612_v17 }
 0x449   : > { %v1032_v49 = vpop.xlane.xlu0 %1031 }
 0x44a   : > { %v1053_v19 = vadd.f32 %v1032_v49, %v877_v14  ;;  %1636 = vpow2.f32 %v863_v31  ;;  %v1099_v31 = vld [vmem:[#allocation3 + $0x18] sm:$0xff] (!%p1351_p1) }
 0x44b   : > { %1638 = vpow2.f32 %v861_v10 }
 0x44c   : > { %1070 = vst.msk [vmem:[#allocation4 + $0x50] sm:$0xff] %vm1059_vm3, %v1053_v19  ;;  %v810_v19 = vld [vmem:[#allocation4 + $0x38] sm:$0xff]  ;;  %1640 = vpow2.f32 %v865_v61 }
 0x44d   : > { %v1012_v30 = vpop.xlane.xlu1 %1011  ;;  %v874_v0 = vmul.f32 %v1633_v59, %v810_v19  ;;  %v1102_v59 = vld [vmem:[#allocation3 + $0x30] sm:$0xff] (!%p1351_p1) }
 0x44e   : > { %v1043_v21 = vadd.f32 %v1012_v30, %v867_v8  ;;  %v808_v8 = vld [vmem:[#allocation4 + $0x28] sm:$0xff] }
 0x44f   : > { %v872_v27 = vmul.f32 %v1635_v16, %v808_v8  ;;  %v1114_v39 = vld [vmem:[#allocation4 + $0x10] sm:$0xff] (!%p1351_p1) }
 0x450   : > { %1060 = vst.msk [vmem:[#allocation4] sm:$0xff] %vm1059_vm3, %v1043_v21 }
 0x451   : > { %v1028_v7 = vpop.xlane.xlu0 %1027 }
 0x452   : > { %v1051_v32 = vadd.f32 %v1028_v7, %v875_v23 }
 0x453   : > { %v1122_v57 = vld [vmem:[#allocation4 + $0x50] sm:$0xff] (!%p1351_p1) }
 0x454   : > { %1068 = vst.msk [vmem:[#allocation4 + $0x40] sm:$0xff] %vm1059_vm3, %v1051_v32  ;;  %v1637_v2 = vpop.eup %1636 }
 0x455   : > { %v1018_v33 = vpop.xlane.xlu1 %1017  ;;  %v1639_v37 = vpop.eup %1638  ;;  %v881_v23 = vmul.f32 %v1637_v2, %v817_v53 }
 0x456   : > { %v1046_v24 = vadd.f32 %v1018_v33, %v870_v6  ;;  %v880_v20 = vmul.f32 %v1639_v37, %v816_v62  ;;  %v1641_v7 = vpop.eup %1640 }
 0x457   : > { %v882_v6 = vmul.f32 %v1641_v7, %v818_v43  ;;  %v1112_v33 = vld [vmem:[#allocation4] sm:$0xff] (!%p1351_p1) }
 0x458   : > { %1063 = vst.msk [vmem:[#allocation4 + $0x18] sm:$0xff] %vm1059_vm3, %v1046_v24  ;;  %1642 = vlog2.f32 (!%p1351_p1), %v1112_v33  ;;  %v1105_v33 = vld [vmem:[#allocation3 + $0x48] sm:$0xff] (!%p1351_p1) }
 0x459   : > { %v1014_v36 = vpop.xlane.xlu0 %1013 }
 0x45a   : > { %v1044_v29 = vadd.f32 %v1014_v36, %v868_v34  ;;  %v1034_v52 = vpop.xlane.xlu1 %1033 }
 0x45b   : > { %v1054_v15 = vadd.f32 %v1034_v52, %v878_v9  ;;  %v1120_v9 = vld [vmem:[#allocation4 + $0x40] sm:$0xff] (!%p1351_p1) }
 0x45c   : > { %1061 = vst.msk [vmem:[#allocation4 + $0x8] sm:$0xff] %vm1059_vm3, %v1044_v29 }
 0x45d   : > { %1071 = vst.msk [vmem:[#allocation4 + $0x58] sm:$0xff] %vm1059_vm3, %v1054_v15  ;;  %v1024_v48 = vpop.xlane.xlu0 %1023  ;;  %v1097_v15 = vld [vmem:[#allocation3 + $0x8] sm:$0xff] (!%p1351_p1) }
 0x45e   : > { %v1049_v13 = vadd.f32 %v1024_v48, %v873_v50  ;;  %v1030_v58 = vpop.xlane.xlu1 %1029  ;;  %v1098_v48 = vld [vmem:[#allocation3 + $0x10] sm:$0xff] (!%p1351_p1) }
 0x45f   : > { %v1052_v4 = vadd.f32 %v1030_v58, %v876_v26  ;;  %v1115_v56 = vld [vmem:[#allocation4 + $0x18] sm:$0xff] (!%p1351_p1) }
 0x460   : > { %1066 = vst.msk [vmem:[#allocation4 + $0x30] sm:$0xff] %vm1059_vm3, %v1049_v13 }
 0x461   : > { %1069 = vst.msk [vmem:[#allocation4 + $0x48] sm:$0xff] %vm1059_vm3, %v1052_v4  ;;  %v1020_v14 = vpop.xlane.xlu0 %1019  ;;  %v1100_v4 = vld [vmem:[#allocation3 + $0x20] sm:$0xff] (!%p1351_p1) }
 0x462   : > { %v1047_v49 = vadd.f32 %v1020_v14, %v871_v5  ;;  %v1643_v52 = vpop.eup (!%p1351_p1), %1642 }
 0x463   : > { %v1113_v28 = vld [vmem:[#allocation4 + $0x8] sm:$0xff] (!%p1351_p1)  ;;  %v1129_v50 = vmul.f32 (!%p1351_p1), 0.6931472, %v1643_v52 }
 0x464   : > { %1064 = vst.msk [vmem:[#allocation4 + $0x20] sm:$0xff] %vm1059_vm3, %v1047_v49  ;;  %1644 = vlog2.f32 (!%p1351_p1), %v1113_v28  ;;  %v1123_v29 = vld [vmem:[#allocation4 + $0x58] sm:$0xff] (!%p1351_p1) }
 0x465   : > { %v1036_v60 = vpop.xlane.xlu0 %1035  ;;  %1646 = vlog2.f32 (!%p1351_p1), %v1114_v39  ;;  %v1160_v47 = vadd.f32 (!%p1351_p1), %v1129_v50, %v1096_v25 }
 0x466   : > { %v1055_v41 = vadd.f32 %v1036_v60, %v879_v18  ;;  %1648 = vlog2.f32 (!%p1351_p1), %v1115_v56 }
 0x467   : > { %v1118_v38 = vld [vmem:[#allocation4 + $0x30] sm:$0xff] (!%p1351_p1)  ;;  %v1176_v61 = vadd.f32 (!%p1351_p1), 1e+08, %v1160_v47 }
 0x468   : > { %1072 = vst.msk [vmem:[#allocation4 + $0x60] sm:$0xff] %vm1059_vm3, %v1055_v41  ;;  %v1121_v45 = vld [vmem:[#allocation4 + $0x48] sm:$0xff] (!%p1351_p1) }
 0x469   : > { %v1026_v42 = vpop.xlane.xlu1 %1025 }
 0x46a   : > { %v1050_v30 = vadd.f32 %v1026_v42, %v874_v0  ;;  %v1103_v42 = vld [vmem:[#allocation3 + $0x38] sm:$0xff] (!%p1351_p1) }
 0x46b   : > { %v1116_v24 = vld [vmem:[#allocation4 + $0x20] sm:$0xff] (!%p1351_p1) }
 0x46c   : > { %1067 = vst.msk [vmem:[#allocation4 + $0x38] sm:$0xff] %vm1059_vm3, %v1050_v30  ;;  %1650 = vlog2.f32 (!%p1351_p1), %v1116_v24 }
 0x46d   : > { %v1022_v21 = vpop.xlane.xlu1 %1021 }
 0x46e   : > { %v1048_v63 = vadd.f32 %v1022_v21, %v872_v27  ;;  %v1645_v55 = vpop.eup (!%p1351_p1), %1644  ;;  %v1192_v27 = vsel (!%p1351_p1), %vm1059_vm3, %v1176_v61, 0.0 }
 0x46f   : > { %v1124_v3 = vld [vmem:[#allocation4 + $0x60] sm:$0xff] (!%p1351_p1)  ;;  %v1647_v44 = vpop.eup (!%p1351_p1), %1646  ;;  %v1131_v40 = vmul.f32 (!%p1351_p1), 0.6931472, %v1645_v55  ;;  %v1107_v55 = vld [vmem:[#allocation3 + $0x58] sm:$0xff] (!%p1351_p1) }
 0x470   : > { %1065 = vst.msk [vmem:[#allocation4 + $0x28] sm:$0xff] %vm1059_vm3, %v1048_v63  ;;  %v1649_v54 = vpop.eup (!%p1351_p1), %1648  ;;  %v1133_v58 = vmul.f32 (!%p1351_p1), 0.6931472, %v1647_v44 }
 0x471   : > { %v1040_v11 = vpop.xlane.xlu0 %1039  ;;  %v1038_v1 = vpop.xlane.xlu1 %1037  ;;  %v1135_v5 = vmul.f32 (!%p1351_p1), 0.6931472, %v1649_v54  ;;  %v1161_v12 = vadd.f32 (!%p1351_p1), %v1131_v40, %v1097_v15  ;;  %v1108_v54 = vld [vmem:[#allocation3 + $0x60] sm:$0xff] (!%p1351_p1) }
 0x472   : > { %v1057_v32 = vadd.f32 %v1040_v11, %v881_v23  ;;  %v1056_v22 = vadd.f32 %v1038_v1, %v880_v20  ;;  %1095 = sbr.rel (%p1351_p1) target bundleno = 1390 (0x56e), region = 36  ;;  %v1162_v17 = vadd.f32 (!%p1351_p1), %v1133_v58, %v1098_v48  ;;  %v1104_v20 = vld [vmem:[#allocation3 + $0x40] sm:$0xff] (!%p1351_p1) }
 0x473   : > { %v1119_v36 = vld [vmem:[#allocation4 + $0x38] sm:$0xff] (!%p1351_p1)  ;;  %v1163_v41 = vadd.f32 (!%p1351_p1), %v1135_v5, %v1099_v31  ;;  %v1177_v0 = vadd.f32 (!%p1351_p1), 1e+08, %v1161_v12  ;;  %v1109_v12 = vld [vmem:[#allocation3 + $0x68] sm:$0xff] (!%p1351_p1) }
 0x474   : > { %1074 = vst.msk [vmem:[#allocation4 + $0x70] sm:$0xff] %vm1059_vm3, %v1057_v32  ;;  %1073 = vst.msk [vmem:[#allocation4 + $0x68] sm:$0xff] %vm1059_vm3, %v1056_v22  ;;  %v1178_v2 = vadd.f32 (!%p1351_p1), 1e+08, %v1162_v17 }
 0x475   : > { %v1042_v46 = vpop.xlane.xlu1 %1041  ;;  %v1179_v62 = vadd.f32 (!%p1351_p1), 1e+08, %v1163_v41  ;;  %v1193_v63 = vsel (!%p1351_p1), %vm1059_vm3, %v1177_v0, 0.0 }
 0x476   : > { %v1058_v51 = vadd.f32 %v1042_v46, %v882_v6  ;;  %v1651_v10 = vpop.eup (!%p1351_p1), %1650  ;;  %v1194_v1 = vadd.f32 (!%p1351_p1), %v1193_v63, %v1192_v27  ;;  %v1195_v46 = vsel (!%p1351_p1), %vm1059_vm3, %v1178_v2, 0.0 }
 0x477   : > { %v1117_v34 = vld [vmem:[#allocation4 + $0x28] sm:$0xff] (!%p1351_p1)  ;;  %v1137_v49 = vmul.f32 (!%p1351_p1), 0.6931472, %v1651_v10 }
 0x478   : > { %1075 = vst.msk [vmem:[#allocation4 + $0x78] sm:$0xff] %vm1059_vm3, %v1058_v51  ;;  %1652 = vlog2.f32 (!%p1351_p1), %v1117_v34  ;;  %v1196_v28 = vadd.f32 (!%p1351_p1), %v1195_v46, %v1194_v1  ;;  %v1197_v34 = vsel (!%p1351_p1), %vm1059_vm3, %v1179_v62, 0.0 }
 0x479   : > { %1654 = vlog2.f32 %v1118_v38  ;;  %v1164_v30 = vadd.f32 %v1137_v49, %v1100_v4 }
 0x47a   : > { %1656 = vlog2.f32 %v1119_v36  ;;  %v1106_v36 = vld [vmem:[#allocation3 + $0x50] sm:$0xff] }
 0x47b   : > { %1658 = vlog2.f32 %v1120_v9  ;;  %v1125_v26 = vld [vmem:[#allocation4 + $0x68] sm:$0xff]  ;;  %v1126_v13 = vld [vmem:[#allocation4 + $0x70] sm:$0xff]  ;;  %v1180_v6 = vadd.f32 1e+08, %v1164_v30 }
 0x47c   : > { %1660 = vlog2.f32 %v1121_v45  ;;  %v1198_v45 = vadd.f32 %v1197_v34, %v1196_v28 }
 0x47d   : > { %1662 = vlog2.f32 %v1122_v57  ;;  %v1199_v25 = vsel %vm1059_vm3, %v1180_v6, 0.0 }
 0x47e   : > { %1664 = vlog2.f32 %v1123_v29  ;;  %v1200_v15 = vadd.f32 %v1199_v25, %v1198_v45 }
 0x47f   : > { %1666 = vlog2.f32 %v1124_v3  ;;  %v1127_v60 = vld [vmem:[#allocation4 + $0x78] sm:$0xff] }
 0x480   : > { %1668 = vlog2.f32 %v1125_v26 }
 0x481   : > { %1670 = vlog2.f32 %v1126_v13 }
 0x482   : > { %v1653_v14 = vpop.eup %1652  ;;  %1672 = vlog2.f32 %v1127_v60 }
 0x483   : > { %v1655_v18 = vpop.eup %1654  ;;  %v1139_v19 = vmul.f32 0.6931472, %v1653_v14 }
 0x484   : > { %v1657_v16 = vpop.eup %1656  ;;  %v1141_v8 = vmul.f32 0.6931472, %v1655_v18  ;;  %v1110_v18 = vld [vmem:[#allocation3 + $0x70] sm:$0xff] }
 0x485   : > { %v1659_v37 = vpop.eup %1658  ;;  %v1143_v21 = vmul.f32 0.6931472, %v1657_v16  ;;  %v1165_v53 = vadd.f32 %v1139_v19, %v1101_v35  ;;  %v1111_v16 = vld [vmem:[#allocation3 + $0x78] sm:$0xff] }
 0x486   : > { %v1661_v23 = vpop.eup %1660  ;;  %v1145_v7 = vmul.f32 0.6931472, %v1659_v37  ;;  %v1166_v11 = vadd.f32 %v1141_v8, %v1102_v59 }
 0x487   : > { %v1663_v43 = vpop.eup %1662  ;;  %v1147_v32 = vmul.f32 0.6931472, %v1661_v23  ;;  %v1167_v22 = vadd.f32 %v1143_v21, %v1103_v42  ;;  %v1181_v24 = vadd.f32 1e+08, %v1165_v53 }
 0x488   : > { %v1665_v51 = vpop.eup %1664  ;;  %v1149_v39 = vmul.f32 0.6931472, %v1663_v43  ;;  %v1168_v56 = vadd.f32 %v1145_v7, %v1104_v20  ;;  %v1182_v9 = vadd.f32 1e+08, %v1166_v11 }
 0x489   : > { %v1667_v38 = vpop.eup %1666  ;;  %v1151_v57 = vmul.f32 0.6931472, %v1665_v51  ;;  %v1169_v29 = vadd.f32 %v1147_v32, %v1105_v33  ;;  %v1183_v52 = vadd.f32 1e+08, %v1167_v22  ;;  %v1201_v40 = vsel %vm1059_vm3, %v1181_v24, 0.0 }
 0x48a   : > { %v1669_v3 = vpop.eup %1668  ;;  %v1153_v44 = vmul.f32 0.6931472, %v1667_v38  ;;  %v1170_v48 = vadd.f32 %v1149_v39, %v1106_v36  ;;  %v1184_v26 = vadd.f32 1e+08, %v1168_v56  ;;  %v1202_v31 = vadd.f32 %v1201_v40, %v1200_v15 }
 0x48b   : > { %v1671_v50 = vpop.eup %1670  ;;  %v1203_v13 = vsel %vm1059_vm3, %v1182_v9, 0.0  ;;  %v1155_v58 = vmul.f32 0.6931472, %v1669_v3  ;;  %v1171_v47 = vadd.f32 %v1151_v57, %v1107_v55  ;;  %v1185_v10 = vadd.f32 1e+08, %v1169_v29 }
 0x48c   : > { %v1205_v4 = vsel %vm1059_vm3, %v1183_v52, 0.0  ;;  %v1673_v5 = vpop.eup %1672  ;;  %v1204_v14 = vadd.f32 %v1203_v13, %v1202_v31  ;;  %v1157_v35 = vmul.f32 0.6931472, %v1671_v50  ;;  %v1172_v49 = vadd.f32 %v1153_v44, %v1108_v54 }
 0x48d   : > { %v1186_v17 = vadd.f32 1e+08, %v1170_v48  ;;  %v1207_v61 = vsel %vm1059_vm3, %v1184_v26, 0.0  ;;  %v1159_v60 = vmul.f32 0.6931472, %v1673_v5  ;;  %v1173_v19 = vadd.f32 %v1155_v58, %v1109_v12 }
 0x48e   : > { %v1206_v59 = vadd.f32 %v1205_v4, %v1204_v14  ;;  %v1187_v41 = vadd.f32 1e+08, %v1171_v47  ;;  %v1209_v0 = vsel %vm1059_vm3, %v1185_v10, 0.0  ;;  %v1174_v8 = vadd.f32 %v1157_v35, %v1110_v18 }
 0x48f   : > { %v1188_v30 = vadd.f32 1e+08, %v1172_v49  ;;  %v1211_v2 = vsel %vm1059_vm3, %v1186_v17, 0.0  ;;  %v1175_v37 = vadd.f32 %v1159_v60, %v1111_v16  ;;  %v1189_v21 = vadd.f32 1e+08, %v1173_v19 }
 0x490   : > { %v1208_v42 = vadd.f32 %v1207_v61, %v1206_v59  ;;  %v1213_v53 = vsel %vm1059_vm3, %v1187_v41, 0.0  ;;  %v1190_v63 = vadd.f32 1e+08, %v1174_v8 }
 0x491   : > { %v1215_v23 = vsel %vm1059_vm3, %v1188_v30, 0.0  ;;  %v1191_v7 = vadd.f32 1e+08, %v1175_v37  ;;  %v1217_v11 = vsel %vm1059_vm3, %v1189_v21, 0.0 }
 0x492   : > { %v1210_v27 = vadd.f32 %v1209_v0, %v1208_v42  ;;  %v1219_v43 = vsel %vm1059_vm3, %v1190_v63, 0.0 }
 0x493   : > { %v1221_v22 = vsel %vm1059_vm3, %v1191_v7, 0.0 }
 0x494   : > { %v1212_v62 = vadd.f32 %v1211_v2, %v1210_v27 }
 0x496   : > { %v1214_v20 = vadd.f32 %v1213_v53, %v1212_v62 }
 0x498   : > { %v1216_v1 = vadd.f32 %v1215_v23, %v1214_v20 }
 0x49a   : > { %v1218_v32 = vadd.f32 %v1217_v11, %v1216_v1 }
 0x49c   : > { %v1220_v6 = vadd.f32 %v1219_v43, %v1218_v32 }
 0x49e   : > { %v1222_v46 = vadd.f32 %v1221_v22, %v1220_v6 }
 0x4a0   : > { %1223 = vadd.xlane.f32.xlu0 %v1222_v46 }
 0x52d   : > { %v1224_v51 = vpop.xlane.xlu0 %1223 }
 0x52e   : > { %v1225_v33 = vrot.slane %v1224_v51, 4 }
 0x530   : > { %v1226_v28 = vadd.f32 %v1225_v33, %v1224_v51 }
 0x532   : > { %v1227_v39 = vrot.slane %v1226_v28, 2 }
 0x534   : > { %v1228_v56 = vadd.f32 %v1227_v39, %v1226_v28 }
 0x536   : > { %v1229_v24 = vrot.slane %v1228_v56, 1 }
 0x538   : > { %v1230_v34 = vadd.f32 %v1229_v24, %v1228_v56 }
 0x53a   : > { %1436 = vpush %v1230_v34 }
 0x56b   : > { %s1437_s12 = spop %1436 }
 0x56c   : > { %v1232_v38 = vstv %s1437_s12 }
 0x56d   : > { %1233 = vst [vmem:[%s165_s18] sm:$0xff] %v1232_v38 }
 0x56e PF: > { %s2543_s30 = scalar_lea.hbm %s2596_s2, %s1349_s23  ;;  %s1248_s3 = sshll.u32 %s165_s18, 4  ;;  %s1249_s3 = int_to_ptr.vmem [resolvable:$true] %s1248_s3 }
 0x56f   : > { %s1235_s4 = scalar_lea.sflag [#allocation6], %s163_s26  ;;  %s1674_s5 = scalar_lea.vmem %s1249_s3, 128 }
 0x570   : > { %p1675_p2 = scmp.ne.s32.totalorder %s1249_s3, %s1674_s5  ;;  %s1773_s6 = smov [#allocation5]  }
 0x571   : > { %s1678_s13 = sshll.u32 %s1773_s6, 4  ;;  %s1679_s13 = int_to_ptr.vmem [resolvable:$false] %s1678_s13 }
 0x572   : > { %p1676_p4 = pnand %p1675_p2, %p1838_p3  ;;  %s1680_s7 = scalar_lea.vmem %s1679_s13, 256 }
 0x573   : > { %p1681_p6 = scmp.lt.s32.totalorder %s1249_s3, %s1679_s13  ;;  %p1682_p7 = scmp.lt.s32.totalorder %s1680_s7, %s1674_s5 }
 0x574   : > { %p1677_p5 = pneg %p1676_p4 }
 0x575   : > { %p1683_p8 = por %p1682_p7, %p1681_p6 }
 0x577   : > { %p1684_p10 = pnand %p1683_p8, %p1677_p5 }
 0x579   : > { %1687 = shalt.err (!%p1684_p10)
}
 0x57a   : > { %s1688_s26 = scalar_lea.hbm %s2543_s30, 128  ;;  %s1692_s17 = scalar_lea.hbm %s2596_s2, 256 }
 0x57b   : > { %p1689_p11 = scmp.ne.s32.totalorder %s2543_s30, %s1688_s26  ;;  %p1693_p0 = scmp.lt.u32.totalorder %s2543_s30, %s2596_s2 }
 0x57c   : > { %p1694_p1 = scmp.lt.u32.totalorder %s1692_s17, %s1688_s26  ;;  %p1696_p4 = scmp.lt.u32.totalorder %s1688_s26, %s2543_s30 }
 0x57d   : > { %p1690_p12 = pnand %p1689_p11, %p1838_p3 }
 0x57e   : > { %p1695_p2 = por %p1694_p1, %p1693_p0 }
 0x57f   : > { %p1691_p13 = pneg %p1690_p12 }
 0x580   : > { %p1697_p5 = por %p1696_p4, %p1695_p2 }
 0x582   : > { %p1698_p6 = pnand %p1697_p5, %p1691_p13 }
 0x584   : > { %1701 = shalt.err (!%p1698_p6)
}
 0x585   : > { %1438 = dma.vmem_to_hbm [thread:$0]  (%p1838_p3), %s1249_s3, 128, %s2543_s30, %s1235_s4  }
 0x586 PF: > { %p1444_p7 = scmp.ge.s32.totalorder %s1768_s16, 2  ;;  %s1260_s24 = sand.u32 1, %s1740_s9  }
 0x587   : > { %s1261_s12 = scalar_lea.sflag [#allocation6], %s1260_s24 }
 0x588   : > { %p1441_p8 = pnand %p1444_p7, %p1848_p9 }
 0x58a   : > { %1735 = dma.done.wait (!%p1441_p8), %s1261_s12, 128  }
 0x58b   : > { %1737 = vsyncadd (!%p1441_p8), %s1261_s12, 4294967168  ;;  %s15_s16 = sadd.s32 1, %s1768_s16   ;;  %s2613_s9 = smov %s1744_s10 }
 0x58c   : > { %p12_p10 = scmp.ge.s32.totalorder %s15_s16, 6   ;;  %s2614_s10 = smov %s1748_s11 }
 0x58d   : > { %s2615_s11 = smov %s1856_s25  ;;  %s2616_s12 = smov %s1760_s14 }
 0x58e   : > { %s2617_s13 = smov %s1764_s15  ;;  %s2618_s14 = smov %s2621_s19 }
 0x58f   : > { %s2619_s15 = smov %s2625_s20  ;;  %14 = sbr.rel (!%p12_p10) target bundleno = 5 (0x5), region = 74 }
 0x596   :  { %1266 = vsyncpa [#allocation6], 1 }
 0x597   :  { %1268 = vsyncpa [#allocation6 + $0x1], 1 }

</bundles_post_ra>
